<compile_context>
chip_gen: v7x
topology: tpu7x:2x2x1
jax: 0.10.0
libtpu: 0.0.40
codegen_flags: <defaults>
</compile_context>

<pallas_src>
import functools

import jax
import jax.numpy as jnp
import numpy as np
from jax.experimental import pallas as pl
from jax.experimental.pallas import tpu as pltpu

_LANE = 128
_NEG = -1e30  # logit value for padded cluster lanes -> softmax prob exactly 0


def _round_up(x, m):
    return ((x + m - 1) // m) * m


def _cdiv(a, b):
    return -(-a // b)


def _n2d_kernel(x_ref, w1_ref, a_ref, lcat_ref, eta_ref, sel_ref, consts_ref, out_ref):
    hp = w1_ref.shape[1]
    cp = a_ref.shape[1]
    kp = out_ref.shape[1]
    b1 = consts_ref[0:1, :hp]      # encoder bias 1
    cb = consts_ref[1:2, :cp]      # folded manifold bias  b2·Wp + bp
    logc = consts_ref[2:3, :kp]    # log pi + log|L| - C/2 log 2pi - 1/2 mu^T P mu (pad = -1e30)

    # ---- encode layer 1: bf16 operands -> f32 MXU accumulation (cast fused in-kernel) ----
    x = x_ref[...].astype(jnp.bfloat16)                                   # [T, Din]
    h = jnp.dot(x, w1_ref[...], preferred_element_type=jnp.float32) + b1  # [T, Hp] f32
    h = jnp.maximum(h, 0.0).astype(jnp.bfloat16)

    # ---- encode layer 2 + manifold, folded into one matmul: y = h @ (W2·Wp) + (b2·Wp + bp) ----
    # TODO(synk): UMAP.transform (fitted, non-parametric) has no clean Pallas
    # equivalent; a linear projection stands in for it (folded into W2 on the host).
    y = jnp.dot(h, a_ref[...], preferred_element_type=jnp.float32) + cb   # [T, Cp] f32

    # ---- cluster: fused GMM posterior (predict_proba), precision-Cholesky form ----
    #   maha_k = y^T P_k y - 2 y^T (P_k mu_k) + mu_k^T P_k mu_k
    #   logits = logc' + y @ Eta - 0.5 * yPy     (all lane-wide matmuls, f32)
    u = jnp.dot(y, lcat_ref[...], preferred_element_type=jnp.float32)        # [T, K*Cp]
    ypy = jnp.dot(u * u, sel_ref[...], preferred_element_type=jnp.float32)   # [T, Kp]
    logits = (logc
              + jnp.dot(y, eta_ref[...], preferred_element_type=jnp.float32)
              - 0.5 * ypy)                                                   # [T, Kp]

    m = jnp.max(logits, axis=-1, keepdims=True)
    e = jnp.exp(logits - m)
    s = jnp.sum(e, axis=-1, keepdims=True)
    out_ref[...] = e / s   # exact normalization: predict_proba rows sum to 1


@functools.partial(jax.jit, static_argnames=("n_cluster", "tile_n"))
def n2d_forward(x, kparams, *, n_cluster, tile_n=512):
    (w1p, ap, lcatp, etap, selp, consts) = kparams
    n, d_in = x.shape
    kp = etap.shape[1]

    # Batch tile: big tiles amortize the ~0.35 us per-grid-step overhead and fill the
    # 256-wide MXU M dim on v6e/v7x; for small batches split into (at most) two
    # blocks so both v7x TensorCores get work.  Tail block handled by Pallas's
    # partial-block masking -> no host-side pad/copy of x.
    two_way = _round_up(max(1, _cdiv(n, 2)), 256)
    tn = max(256, min(tile_n, two_way))
    n_blocks = _cdiv(n, tn)

    row = lambda i: (i, 0)        # batch-tiled operands
    const = lambda i: (0, 0)      # resident weights / GMM constants

    in_specs = [
        pl.BlockSpec((tn, d_in), row),
        pl.BlockSpec(w1p.shape, const),
        pl.BlockSpec(ap.shape, const),
        pl.BlockSpec(lcatp.shape, const),
        pl.BlockSpec(etap.shape, const),
        pl.BlockSpec(selp.shape, const),
        pl.BlockSpec(consts.shape, const),
    ]
    out_specs = pl.BlockSpec((tn, kp), row)

    flops = 2 * n_blocks * tn * (w1p.shape[0] * w1p.shape[1]
                                 + ap.shape[0] * ap.shape[1]
                                 + lcatp.shape[0] * lcatp.shape[1]
                                 + selp.shape[0] * selp.shape[1]
                                 + etap.shape[0] * etap.shape[1])
    bytes_accessed = int(
        x.size * x.dtype.itemsize
        + sum(a.size * a.dtype.itemsize for a in (w1p, ap, lcatp, etap, selp, consts))
        + n * kp * 4)

    out = pl.pallas_call(
        _n2d_kernel,
        out_shape=jax.ShapeDtypeStruct((n, kp), jnp.float32),
        grid=(n_blocks,),
        in_specs=in_specs,
        out_specs=out_specs,
        compiler_params=pltpu.CompilerParams(
            dimension_semantics=("parallel",),
            vmem_limit_bytes=32 * 1024 * 1024),
        cost_estimate=pl.CostEstimate(
            flops=int(flops),
            transcendentals=int(n_blocks * tn * kp),
            bytes_accessed=bytes_accessed),
    )(x, w1p, ap, lcatp, etap, selp, consts)

    return out[:, :n_cluster]


def make_raw_params(key, d_in, hidden, latent, n_cluster):
    """Unpadded f32 parameters for encoder MLP, linear manifold, and GMM."""
    ks = jax.random.split(key, 10)
    w1 = jax.random.normal(ks[0], (d_in, hidden), jnp.float32) * (1.0 / np.sqrt(d_in))
    b1 = 0.1 * jax.random.normal(ks[6], (1, hidden), jnp.float32)
    w2 = jax.random.normal(ks[1], (hidden, latent), jnp.float32) * (1.0 / np.sqrt(hidden))
    b2 = 0.1 * jax.random.normal(ks[7], (1, latent), jnp.float32)
    wp = jax.random.normal(ks[2], (latent, n_cluster), jnp.float32) * (1.0 / np.sqrt(latent))
    bp = 0.1 * jax.random.normal(ks[8], (1, n_cluster), jnp.float32)

    C = n_cluster
    mu = jax.random.normal(ks[3], (n_cluster, C), jnp.float32)
    a = jax.random.normal(ks[4], (n_cluster, C, C), jnp.float32)
    prec = jnp.einsum('kij,klj->kil', a, a) / C + jnp.eye(C)[None] * 1.5
    chol = jnp.linalg.cholesky(prec).astype(jnp.float32)  # lower Cholesky of precision
    logdet = jnp.sum(jnp.log(jnp.diagonal(chol, axis1=1, axis2=2)), axis=-1)   # [K]
    pi = jax.nn.softmax(jax.random.normal(ks[5], (n_cluster,), jnp.float32))
    logc = (jnp.log(pi) + logdet - 0.5 * C * jnp.log(2.0 * jnp.pi)).reshape(1, n_cluster)
    return (w1, b1, w2, b2, wp, bp, mu, chol, logc.astype(jnp.float32))


def pack_params(raw, pad=_LANE):
    """Fold manifold into the encoder, fold GMM constants, pad lane-dense, cast bf16."""
    (w1, b1, w2, b2, wp, bp, mu, chol, logc) = raw
    d_in, hidden = w1.shape
    C = wp.shape[1]
    K = mu.shape[0]
    Hp, Cp, Kp = _round_up(hidden, pad), _round_up(C, pad), _round_up(K, pad)
    KCp = _round_up(K * C, pad)

    def pad2(a, r, c, dtype=jnp.float32):
        out = jnp.zeros((r, c), dtype)
        return out.at[:a.shape[0], :a.shape[1]].set(a.astype(dtype))

    # Encoder layer 1 (feature dim left at d_in; x is consumed unpadded).
    w1p = pad2(w1, d_in, Hp, jnp.bfloat16)

    # Fold encoder layer 2 + linear manifold (no nonlinearity in between):
    #   y = h @ (W2·Wp) + (b2·Wp + bp)
    a_fold = w2 @ wp                       # [hidden, C] f32
    c_fold = b2 @ wp + bp                  # [1, C]      f32
    ap = pad2(a_fold, Hp, Cp, jnp.bfloat16)

    # Fused GMM constants (all f32 for accuracy of the expanded Mahalanobis form):
    prec = jnp.einsum('kij,klj->kil', chol, chol)              # P_k = L_k L_k^T
    eta = jnp.einsum('kij,kj->ki', prec, mu)                   # [K, C], row k = P_k mu_k
    quad = jnp.einsum('ki,ki->k', mu, eta)                     # mu_k^T P_k mu_k
    l_cat = jnp.transpose(chol, (1, 0, 2)).reshape(C, K * C)   # [C, K*C], block k = L_k

    lcatp = pad2(l_cat, Cp, KCp)
    etap = pad2(eta.T, Cp, Kp)

    sel = np.zeros((KCp, Kp), np.float32)                      # per-cluster block-sum selector
    for k in range(K):
        sel[k * C:(k + 1) * C, k] = 1.0
    selp = jnp.asarray(sel)

    # All tiny per-row constants packed into ONE resident (8, W) tile:
    #   row 0: b1 (width Hp)   row 1: b2·Wp + bp (width Cp)   row 2: folded logc (width Kp)
    W = max(Hp, Cp, Kp)
    consts = np.zeros((8, W), np.float32)
    consts[0, :hidden] = np.asarray(b1).reshape(-1)
    consts[1, :C] = np.asarray(c_fold).reshape(-1)
    consts[2, :] = _NEG
    consts[2, :K] = np.asarray(logc).reshape(-1) - 0.5 * np.asarray(quad)
    consts = jnp.asarray(consts)

    return (w1p, ap, lcatp, etap, selp, consts)


def n2d_reference(x, raw):
    """Pure-JAX reference: encoder (bf16 rounding points mirroring the kernel, incl.
    the host-side W2·Wp fold), linear manifold, GMM predict_proba in the DIRECT
    (y - mu) precision-Cholesky form (independent of the kernel's expanded form)."""
    (w1, b1, w2, b2, wp, bp, mu, chol, logc) = raw
    xb = x.astype(jnp.bfloat16)
    h = jnp.dot(xb, w1.astype(jnp.bfloat16), preferred_element_type=jnp.float32) + b1
    h = jnp.maximum(h, 0.0).astype(jnp.bfloat16)
    a_fold = (w2 @ wp).astype(jnp.bfloat16)     # same fold + bf16 rounding as the kernel
    c_fold = b2 @ wp + bp
    y = jnp.dot(h, a_fold, preferred_element_type=jnp.float32) + c_fold
    diff = y[:, None, :] - mu[None, :, :]                      # [N, K, C]
    u = jnp.einsum('nkc,kcd->nkd', diff, chol)
    maha = jnp.sum(u * u, axis=-1)                             # [N, K]
    logits = logc - 0.5 * maha
    return jax.nn.softmax(logits, axis=-1)


if __name__ == "__main__":
    N, D_IN, HIDDEN, LATENT, N_CLUSTER = 300, 64, 32, 16, 4

    key = jax.random.PRNGKey(0)
    kx, kparam_key = jax.random.split(key)
    x = jax.random.normal(kx, (N, D_IN), jnp.float32)
    raw = make_raw_params(kparam_key, D_IN, HIDDEN, LATENT, N_CLUSTER)
    kparams = pack_params(raw)

    prob = n2d_forward(x, kparams, n_cluster=N_CLUSTER)
    prob = jax.block_until_ready(prob)

    ref = n2d_reference(x, raw)
    np.testing.assert_allclose(np.asarray(prob), np.asarray(ref), rtol=2e-3, atol=3e-4)
    # rows of predict_proba must sum to 1 (exact divide in the epilogue)
    np.testing.assert_allclose(np.asarray(prob).sum(-1), np.ones(N), rtol=0, atol=1e-5)

    print("KERNEL_OK")
</pallas_src>

<mosaic_0001>
module attributes {stable_mosaic.version = 11 : i64} {
  func.func @_n2d_kernel(%arg0: i32, %arg1: memref<256x64xf32, #tpu.memory_space<vmem>>, %arg2: memref<64x128xbf16, #tpu.memory_space<vmem>>, %arg3: memref<128x128xbf16, #tpu.memory_space<vmem>>, %arg4: memref<128x128xf32, #tpu.memory_space<vmem>>, %arg5: memref<128x128xf32, #tpu.memory_space<vmem>>, %arg6: memref<128x128xf32, #tpu.memory_space<vmem>>, %arg7: memref<8x128xf32, #tpu.memory_space<vmem>>, %arg8: memref<256x128xf32, #tpu.memory_space<vmem>>) attributes {dimension_semantics = [#tpu.dimension_semantics<parallel>], iteration_bounds = array<i64: 2>, scalar_prefetch = 0 : i64, scratch_operands = 0 : i64, tpu.core_type = #tpu.core_type<tc>, window_params = [{transform_indices = @transform_0, window_bounds = array<i64: 256, 64>}, {pipeline_mode = #tpu.pipeline_mode<synchronous>, transform_indices = @transform_1, window_bounds = array<i64: 64, 128>}, {pipeline_mode = #tpu.pipeline_mode<synchronous>, transform_indices = @transform_2, window_bounds = array<i64: 128, 128>}, {pipeline_mode = #tpu.pipeline_mode<synchronous>, transform_indices = @transform_3, window_bounds = array<i64: 128, 128>}, {pipeline_mode = #tpu.pipeline_mode<synchronous>, transform_indices = @transform_4, window_bounds = array<i64: 128, 128>}, {pipeline_mode = #tpu.pipeline_mode<synchronous>, transform_indices = @transform_5, window_bounds = array<i64: 128, 128>}, {pipeline_mode = #tpu.pipeline_mode<synchronous>, transform_indices = @transform_6, window_bounds = array<i64: 8, 128>}, {transform_indices = @transform_7, window_bounds = array<i64: 256, 128>}]} {
    %c0 = arith.constant 0 : index
    %c0_0 = arith.constant 0 : index
    %0 = vector.load %arg7[%c0, %c0_0] : memref<8x128xf32, #tpu.memory_space<vmem>>, vector<1x128xf32>
    %c1 = arith.constant 1 : index
    %c0_1 = arith.constant 0 : index
    %1 = vector.load %arg7[%c1, %c0_1] : memref<8x128xf32, #tpu.memory_space<vmem>>, vector<1x128xf32>
    %c2 = arith.constant 2 : index
    %c0_2 = arith.constant 0 : index
    %2 = vector.load %arg7[%c2, %c0_2] : memref<8x128xf32, #tpu.memory_space<vmem>>, vector<1x128xf32>
    %c0_3 = arith.constant 0 : index
    %c0_4 = arith.constant 0 : index
    %3 = vector.load %arg1[%c0_3, %c0_4] : memref<256x64xf32, #tpu.memory_space<vmem>>, vector<256x64xf32>
    %4 = arith.truncf %3 : vector<256x64xf32> to vector<256x64xbf16>
    %c0_5 = arith.constant 0 : index
    %c0_6 = arith.constant 0 : index
    %5 = vector.load %arg2[%c0_5, %c0_6] : memref<64x128xbf16, #tpu.memory_space<vmem>>, vector<64x128xbf16>
    %cst = arith.constant dense<0.000000e+00> : vector<256x128xf32>
    %6 = tpu.matmul %4, %5, %cst {dimension_numbers = #tpu.dot_dimension_numbers<[1], [0], [0], [1], [0, 0, 1, 1], [], []>} : vector<256x64xbf16>, vector<64x128xbf16>, vector<256x128xf32> -> vector<256x128xf32>
    %7 = vector.broadcast %0 : vector<1x128xf32> to vector<256x128xf32>
    %8 = arith.addf %6, %7 : vector<256x128xf32>
    %cst_7 = arith.constant 0.000000e+00 : f32
    %9 = vector.broadcast %cst_7 : f32 to vector<256x128xf32>
    %10 = arith.maximumf %8, %9 : vector<256x128xf32>
    %11 = arith.truncf %10 : vector<256x128xf32> to vector<256x128xbf16>
    %c0_8 = arith.constant 0 : index
    %c0_9 = arith.constant 0 : index
    %12 = vector.load %arg3[%c0_8, %c0_9] : memref<128x128xbf16, #tpu.memory_space<vmem>>, vector<128x128xbf16>
    %cst_10 = arith.constant dense<0.000000e+00> : vector<256x128xf32>
    %13 = tpu.matmul %11, %12, %cst_10 {dimension_numbers = #tpu.dot_dimension_numbers<[1], [0], [0], [1], [0, 0, 1, 1], [], []>} : vector<256x128xbf16>, vector<128x128xbf16>, vector<256x128xf32> -> vector<256x128xf32>
    %14 = vector.broadcast %1 : vector<1x128xf32> to vector<256x128xf32>
    %15 = arith.addf %13, %14 : vector<256x128xf32>
    %c0_11 = arith.constant 0 : index
    %c0_12 = arith.constant 0 : index
    %16 = vector.load %arg4[%c0_11, %c0_12] : memref<128x128xf32, #tpu.memory_space<vmem>>, vector<128x128xf32>
    %cst_13 = arith.constant dense<0.000000e+00> : vector<256x128xf32>
    %17 = tpu.matmul %15, %16, %cst_13 {dimension_numbers = #tpu.dot_dimension_numbers<[1], [0], [0], [1], [0, 0, 1, 1], [], []>} : vector<256x128xf32>, vector<128x128xf32>, vector<256x128xf32> -> vector<256x128xf32>
    %18 = arith.mulf %17, %17 : vector<256x128xf32>
    %c0_14 = arith.constant 0 : index
    %c0_15 = arith.constant 0 : index
    %19 = vector.load %arg6[%c0_14, %c0_15] : memref<128x128xf32, #tpu.memory_space<vmem>>, vector<128x128xf32>
    %cst_16 = arith.constant dense<0.000000e+00> : vector<256x128xf32>
    %20 = tpu.matmul %18, %19, %cst_16 {dimension_numbers = #tpu.dot_dimension_numbers<[1], [0], [0], [1], [0, 0, 1, 1], [], []>} : vector<256x128xf32>, vector<128x128xf32>, vector<256x128xf32> -> vector<256x128xf32>
    %c0_17 = arith.constant 0 : index
    %c0_18 = arith.constant 0 : index
    %21 = vector.load %arg5[%c0_17, %c0_18] : memref<128x128xf32, #tpu.memory_space<vmem>>, vector<128x128xf32>
    %cst_19 = arith.constant dense<0.000000e+00> : vector<256x128xf32>
    %22 = tpu.matmul %15, %21, %cst_19 {dimension_numbers = #tpu.dot_dimension_numbers<[1], [0], [0], [1], [0, 0, 1, 1], [], []>} : vector<256x128xf32>, vector<128x128xf32>, vector<256x128xf32> -> vector<256x128xf32>
    %23 = vector.broadcast %2 : vector<1x128xf32> to vector<256x128xf32>
    %24 = arith.addf %23, %22 : vector<256x128xf32>
    %cst_20 = arith.constant 5.000000e-01 : f32
    %25 = vector.broadcast %cst_20 : f32 to vector<256x128xf32>
    %26 = arith.mulf %25, %20 : vector<256x128xf32>
    %27 = arith.subf %24, %26 : vector<256x128xf32>
    %cst_21 = arith.constant dense<0xFF800000> : vector<256xf32>
    %28 = vector.multi_reduction <maximumf>, %27, %cst_21 [1] : vector<256x128xf32> to vector<256xf32>
    %29 = vector.shape_cast %28 : vector<256xf32> to vector<256x1xf32>
    %30 = vector.broadcast %29 : vector<256x1xf32> to vector<256x128xf32>
    %31 = arith.subf %27, %30 : vector<256x128xf32>
    %32 = math.exp %31 : vector<256x128xf32>
    %cst_22 = arith.constant dense<0.000000e+00> : vector<256xf32>
    %33 = vector.multi_reduction <add>, %32, %cst_22 [1] : vector<256x128xf32> to vector<256xf32>
    %34 = vector.shape_cast %33 : vector<256xf32> to vector<256x1xf32>
    %35 = vector.broadcast %34 : vector<256x1xf32> to vector<256x128xf32>
    %36 = arith.divf %32, %35 : vector<256x128xf32>
    %c0_23 = arith.constant 0 : index
    %c0_24 = arith.constant 0 : index
    %37 = vector.load %arg8[%c0_23, %c0_24] : memref<256x128xf32, #tpu.memory_space<vmem>>, vector<256x128xf32>
    tpu.vector_store %arg8[%c0_23, %c0_24], %36 {strides = array<i32>} : memref<256x128xf32, #tpu.memory_space<vmem>>, vector<256x128xf32>,
    return
  }
  func.func @transform_0(%arg0: i32) -> (i32, i32) {
    %c0_i32 = arith.constant 0 : i32
    %c0_i32_0 = arith.constant 0 : i32
    return %arg0, %c0_i32 : i32, i32
  }
  func.func @transform_1(%arg0: i32) -> (i32, i32) {
    %c0_i32 = arith.constant 0 : i32
    %c0_i32_0 = arith.constant 0 : i32
    %c0_i32_1 = arith.constant 0 : i32
    return %c0_i32, %c0_i32_0 : i32, i32
  }
  func.func @transform_2(%arg0: i32) -> (i32, i32) {
    %c0_i32 = arith.constant 0 : i32
    %c0_i32_0 = arith.constant 0 : i32
    %c0_i32_1 = arith.constant 0 : i32
    return %c0_i32, %c0_i32_0 : i32, i32
  }
  func.func @transform_3(%arg0: i32) -> (i32, i32) {
    %c0_i32 = arith.constant 0 : i32
    %c0_i32_0 = arith.constant 0 : i32
    %c0_i32_1 = arith.constant 0 : i32
    return %c0_i32, %c0_i32_0 : i32, i32
  }
  func.func @transform_4(%arg0: i32) -> (i32, i32) {
    %c0_i32 = arith.constant 0 : i32
    %c0_i32_0 = arith.constant 0 : i32
    %c0_i32_1 = arith.constant 0 : i32
    return %c0_i32, %c0_i32_0 : i32, i32
  }
  func.func @transform_5(%arg0: i32) -> (i32, i32) {
    %c0_i32 = arith.constant 0 : i32
    %c0_i32_0 = arith.constant 0 : i32
    %c0_i32_1 = arith.constant 0 : i32
    return %c0_i32, %c0_i32_0 : i32, i32
  }
  func.func @transform_6(%arg0: i32) -> (i32, i32) {
    %c0_i32 = arith.constant 0 : i32
    %c0_i32_0 = arith.constant 0 : i32
    %c0_i32_1 = arith.constant 0 : i32
    return %c0_i32, %c0_i32_0 : i32, i32
  }
  func.func @transform_7(%arg0: i32) -> (i32, i32) {
    %c0_i32 = arith.constant 0 : i32
    %c0_i32_0 = arith.constant 0 : i32
    return %arg0, %c0_i32 : i32, i32
  }
}

</mosaic_0001>

<bundles_post_ra>
// kernel: n2d_forward.1
= control target key start
LH: loop header
LB: loop body
LE: loop exit
PB: predicated region body
PF: predicated region fallthrough
CT: control target
= control target key end

     0   :  { %s3423_s24 = smov 0   ;;  %s3425_s25 = smov 0   ;;  %s4383_s0 = inlined_call_operand.vmem [shape: f32[300,64], index: 0, kind: input, shape index: {}]   ;;  %s4384_s1 = inlined_call_operand.vmem [shape: bf16[64,128], index: 1, kind: input, shape index: {}]   ;;  %s4385_s2 = inlined_call_operand.vmem [shape: bf16[128,128], index: 2, kind: input, shape index: {}]   ;;  %s4386_s3 = inlined_call_operand.vmem [shape: f32[128,128], index: 3, kind: input, shape index: {}]   ;;  %s4387_s4 = inlined_call_operand.vmem [shape: f32[128,128], index: 4, kind: input, shape index: {}]   ;;  %s4388_s5 = inlined_call_operand.vmem [shape: f32[128,128], index: 5, kind: input, shape index: {}]   ;;  %s4389_s6 = inlined_call_operand.vmem [shape: f32[8,128], index: 6, kind: input, shape index: {}]   ;;  %s4390_s7 = inlined_call_operand.vmem [shape: f32[300,128], index: 7, kind: output, shape index: {}]  }
   0x1   :  { %s3427_s26 = smov 0  }
   0x2 LB: > { %s3436_s27 = sadd.s32 4294967295, %s3349_s26   ;;  %s3438_s28 = sadd.s32 1, %s3349_s26   ;;  %s3349_s26 = sphi %s3427_s26, %s4399_s26   ;;  %s3345_s25 = sphi %s3425_s25, %s4398_s25   ;;  %s3341_s24 = sphi %s3423_s24, %s4397_s24  }
   0x3   : > { %s173_s29 = ssub.s32 %s3349_s26, %s3438_s28  ;;  %s176_s30 = sadd.s32 1, %s3345_s25 }
   0x4   : > { %p174_p0 = scmp.eq.s32.totalorder %s173_s29, 0  ;;  %p186_p1 = scmp.ne.s32.totalorder %s3345_s25, %s3341_s24 }
   0x5   : > { %p187_p2 = scmp.eq.s32.totalorder %s3436_s27, 1  ;;  %p2392_p3 = scmp.ge.s32.totalorder %s3349_s26, 1 }
   0x6   : > { %s3446_s8 = scalar_select %p174_p0, %s3345_s25, %s176_s30  }
   0x7   : > { %p3448_p4 = por %p187_p2, %p186_p1  ;;  %p246_p5 = scmp.lt.s32.totalorder %s3349_s26, 3 }
   0x9   : > { %p247_p6 = pnand %p2392_p3, %p246_p5 }
   0xa   : > { %v3155_v0 = vld [vmem:[%s4384_s1] sm:$0xff] (!%p247_p6)   ;;  %s3456_s12 = sshll.u32 (!%p247_p6), %s3436_s27, 5  ;;  %v3156_v1 = vld [vmem:[%s4384_s1 + $0x8] sm:$0xff] (!%p247_p6)   ;;  %v3157_v2 = vld [vmem:[%s4384_s1 + $0x10] sm:$0xff] (!%p247_p6)   ;;  %vm388_vm0 = vcmask (!%p247_p6), 523264   ;;  %s278_s14 = sand.u32 (!%p247_p6), 1, %s3341_s24  }
   0xb   : > { %250 = sbr.rel (%p247_p6) target bundleno = 1332 (0x534), region = 48  ;;  %p286_p7 = scmp.lt.s32.totalorder (!%p247_p6), %s3456_s12, 37  ;;  %2635 = vmatprep.subr.bf16.mxu0 (!%p247_p6), %v3155_v0  ;;  %3059 = vmatprep.subr.bf16.mxu1 (!%p247_p6), %v3155_v0  ;;  %v3158_v5 = vld [vmem:[%s4384_s1 + $0x18] sm:$0xff] (!%p247_p6)   ;;  %v3159_v7 = vld [vmem:[%s4385_s2] sm:$0xff] (!%p247_p6)   ;;  %v3160_v23 = vld [vmem:[%s4385_s2 + $0x8] sm:$0xff] (!%p247_p6)  }
   0xc   : > { %2636 = vmatpush3.bf16.msra.mxu0 (!%p247_p6), %v3155_v0  ;;  %3063 = vmatpush3.bf16.msra.mxu1 (!%p247_p6), %v3155_v0  ;;  %v3161_v31 = vld [vmem:[%s4385_s2 + $0x10] sm:$0xff] (!%p247_p6)   ;;  %v3162_v37 = vld [vmem:[%s4385_s2 + $0x18] sm:$0xff] (!%p247_p6)   ;;  %v3163_v46 = vld [vmem:[%s4385_s2 + $0x20] sm:$0xff] (!%p247_p6)  }
   0xd   : > { %2637 = vmatprep.subr.bf16.mxu0 (!%p247_p6), %v3156_v1  ;;  %3060 = vmatprep.subr.bf16.mxu1 (!%p247_p6), %v3156_v1  ;;  %v3164_v51 = vld [vmem:[%s4385_s2 + $0x28] sm:$0xff] (!%p247_p6)   ;;  %v3165_v58 = vld [vmem:[%s4385_s2 + $0x30] sm:$0xff] (!%p247_p6)   ;;  %v3166_v59 = vld [vmem:[%s4385_s2 + $0x38] sm:$0xff] (!%p247_p6)  }
   0xe   : > { %v875_v60 = vld [vmem:[%s4386_s3] sm:$0xff] (!%p247_p6)  ;;  %v876_v61 = vld [vmem:[%s4386_s3 + $0x8] sm:$0xff] (!%p247_p6)  ;;  %v877_v62 = vld [vmem:[%s4386_s3 + $0x10] sm:$0xff] (!%p247_p6) }
   0xf   : > { %v2963_v63 = vpack.c.bf16 (!%p247_p6), %v876_v61, %v875_v60  ;;  %v878_v0 = vld [vmem:[%s4386_s3 + $0x18] sm:$0xff] (!%p247_p6) }
  0x10   : > { %2638 = vmatpush3.bf16.msra.mxu0 (!%p247_p6), %v3156_v1  ;;  %3064 = vmatpush3.bf16.msra.mxu1 (!%p247_p6), %v3156_v1  ;;  %v2967_v1 = vpack.c.bf16 (!%p247_p6), %v878_v0, %v877_v62 }
  0x11   : > { %2639 = vmatprep.subr.bf16.mxu0 (!%p247_p6), %v3157_v2  ;;  %3061 = vmatprep.subr.bf16.mxu1 (!%p247_p6), %v3157_v2 }
  0x12   : > { %s287_s15 = scalar_select %p286_p7, %s3456_s12, 37 }
  0x13   : > { %s2058_s24 = ssub.s32 (%p3448_p4), 38, %s3456_s12  ;;  %s2444_s17 = sshll.u32 (%p3448_p4), %s3436_s27, 8 }
  0x14   : > { %s2395_s18 = sshll.u32 %s287_s15, 3  ;;  %2640 = vmatpush3.bf16.msra.mxu0 %v3157_v2  ;;  %3065 = vmatpush3.bf16.msra.mxu1 %v3157_v2  ;;  %v879_v2 = vld [vmem:[%s4386_s3 + $0x20] sm:$0xff]  ;;  %s2393_s15 = sshll.u32 %s278_s14, 8 }
  0x15   : > { %s3469_s21 = scalar_lea.vmem %s4383_s0, %s2395_s18  ;;  %2641 = vmatprep.subr.bf16.mxu0 %v3158_v5  ;;  %3062 = vmatprep.subr.bf16.mxu1 %v3158_v5  ;;  %s4179_s16 = scalar_lea.vmem [#allocation2], %s2393_s15  }
  0x16   : > { %v304_v3 = vld [vmem:[%s3469_s21] sm:$0xff]  ;;  %v305_v4 = vld [vmem:[%s3469_s21 + $0x8] sm:$0xff]  ;;  %v306_v8 = vld [vmem:[%s3469_s21 + $0x10] sm:$0xff]  ;;  %p2059_p8 = scmp.lt.s32.totalorder (%p3448_p4), %s2058_s24, 32  ;;  %s4251_s20 = scalar_lea.vmem (%p3448_p4), %s4390_s7, %s2444_s17  }
  0x17   : > { %v336_v6 = vpack.c.bf16 %v305_v4, %v304_v3  ;;  %v307_v9 = vld [vmem:[%s3469_s21 + $0x18] sm:$0xff]  ;;  %v308_v10 = vld [vmem:[%s3469_s21 + $0x20] sm:$0xff]  ;;  %v309_v11 = vld [vmem:[%s3469_s21 + $0x28] sm:$0xff] }
  0x18   : > { %v320_v12 = vld [vmem:[%s3469_s21 + $0x80] sm:$0xff]  ;;  %v321_v13 = vld [vmem:[%s3469_s21 + $0x88] sm:$0xff]  ;;  %v322_v15 = vld [vmem:[%s3469_s21 + $0x90] sm:$0xff]  ;;  %v337_v18 = vpack.c.bf16 %v307_v9, %v306_v8  ;;  %2642 = vmatpush3.bf16.msra.mxu0 %v3158_v5  ;;  %v338_v21 = vpack.c.bf16 %v309_v11, %v308_v10  ;;  %3066 = vmatpush3.bf16.msra.mxu1 %v3158_v5 }
  0x19   : > { %2643 = vmatprep.mubr.msk.bf16.mxu0 %vm388_vm0, %v336_v6  ;;  %v344_v14 = vpack.c.bf16 %v321_v13, %v320_v12  ;;  %v323_v16 = vld [vmem:[%s3469_s21 + $0x98] sm:$0xff]  ;;  %v324_v17 = vld [vmem:[%s3469_s21 + $0xa0] sm:$0xff]  ;;  %v325_v20 = vld [vmem:[%s3469_s21 + $0xa8] sm:$0xff]  ;;  %2675 = vmatprep.subr.bf16.mxu1 %v3159_v7 }
  0x1a   : > { %v345_v19 = vpack.c.bf16 %v323_v16, %v322_v15  ;;  %v346_v22 = vpack.c.bf16 %v325_v20, %v324_v17  ;;  %v310_v24 = vld [vmem:[%s3469_s21 + $0x30] sm:$0xff]  ;;  %v311_v25 = vld [vmem:[%s3469_s21 + $0x38] sm:$0xff]  ;;  %v312_v27 = vld [vmem:[%s3469_s21 + $0x40] sm:$0xff]  ;;  %2964 = vmatprep.subr.bf16.mxu0 %v2963_v63 }
  0x1b   : > { %2659 = vmatprep.mubr.msk.bf16.mxu1 %vm388_vm0, %v344_v14  ;;  %v326_v26 = vld [vmem:[%s3469_s21 + $0xb0] sm:$0xff]  ;;  %2644 = vmatmul.mubr.msk.bf16.vlgmr.msra.gmra.mrb[0].mxu0 %vm388_vm0, %v337_v18  ;;  %v313_v28 = vld [vmem:[%s3469_s21 + $0x48] sm:$0xff]  ;;  %v327_v29 = vld [vmem:[%s3469_s21 + $0xb8] sm:$0xff]  ;;  %v339_v33 = vpack.c.bf16 %v311_v25, %v310_v24 }
  0x1c   : > { %2660 = vmatmul.mubr.msk.bf16.vlgmr.msra.gmra.mrb[0].mxu1 %vm388_vm0, %v345_v19  ;;  %2647 = vmatprep.mubr.msk.bf16.mxu0 %vm388_vm0, %v338_v21  ;;  %v328_v30 = vld [vmem:[%s3469_s21 + $0xc0] sm:$0xff]  ;;  %v329_v32 = vld [vmem:[%s3469_s21 + $0xc8] sm:$0xff]  ;;  %v347_v34 = vpack.c.bf16 %v327_v29, %v326_v26  ;;  %v340_v35 = vpack.c.bf16 %v313_v28, %v312_v27  ;;  %v314_v38 = vld [vmem:[%s3469_s21 + $0x50] sm:$0xff] }
  0x1d   : > { %2663 = vmatprep.mubr.msk.bf16.mxu1 %vm388_vm0, %v346_v22  ;;  %2676 = vmatpush3.bf16.msra.mxu1 %v3159_v7  ;;  %v348_v36 = vpack.c.bf16 %v329_v32, %v328_v30  ;;  %v315_v39 = vld [vmem:[%s3469_s21 + $0x58] sm:$0xff]  ;;  %v316_v40 = vld [vmem:[%s3469_s21 + $0x60] sm:$0xff]  ;;  %v330_v41 = vld [vmem:[%s3469_s21 + $0xd0] sm:$0xff] }
  0x1e   : > { %2677 = vmatprep.subr.bf16.mxu1 %v3160_v23  ;;  %v331_v42 = vld [vmem:[%s3469_s21 + $0xd8] sm:$0xff]  ;;  %v317_v43 = vld [vmem:[%s3469_s21 + $0x68] sm:$0xff]  ;;  %v332_v44 = vld [vmem:[%s3469_s21 + $0xe0] sm:$0xff]  ;;  %v341_v47 = vpack.c.bf16 %v315_v39, %v314_v38  ;;  %2966 = vmatpush3.bf16.msra.mxu0 %v2963_v63 }
  0x1f   : > { %v333_v45 = vld [vmem:[%s3469_s21 + $0xe8] sm:$0xff]  ;;  %v349_v48 = vpack.c.bf16 %v331_v42, %v330_v41  ;;  %v342_v49 = vpack.c.bf16 %v317_v43, %v316_v40  ;;  %v318_v52 = vld [vmem:[%s3469_s21 + $0x70] sm:$0xff]  ;;  %v319_v53 = vld [vmem:[%s3469_s21 + $0x78] sm:$0xff]  ;;  %2968 = vmatprep.subr.bf16.mxu0 %v2967_v1 }
  0x20   : > { %v350_v50 = vpack.c.bf16 %v333_v45, %v332_v44  ;;  %v334_v54 = vld [vmem:[%s3469_s21 + $0xf0] sm:$0xff]  ;;  %v335_v55 = vld [vmem:[%s3469_s21 + $0xf8] sm:$0xff]  ;;  %v343_v56 = vpack.c.bf16 %v319_v53, %v318_v52  ;;  %v880_v3 = vld [vmem:[%s4386_s3 + $0x28] sm:$0xff] }
  0x21   : > { %2678 = vmatpush3.bf16.msra.mxu1 %v3160_v23  ;;  %v351_v57 = vpack.c.bf16 %v335_v55, %v334_v54  ;;  %v2971_v4 = vpack.c.bf16 %v880_v3, %v879_v2  ;;  %v881_v5 = vld [vmem:[%s4386_s3 + $0x30] sm:$0xff]  ;;  %v882_v6 = vld [vmem:[%s4386_s3 + $0x38] sm:$0xff]  ;;  %v883_v8 = vld [vmem:[%s4386_s3 + $0x40] sm:$0xff] }
  0x22   : > { %2679 = vmatprep.subr.bf16.mxu1 %v3161_v31  ;;  %2970 = vmatpush3.bf16.msra.mxu0 %v2967_v1  ;;  %v2975_v7 = vpack.c.bf16 %v882_v6, %v881_v5  ;;  %v884_v9 = vld [vmem:[%s4386_s3 + $0x48] sm:$0xff]  ;;  %v885_v11 = vld [vmem:[%s4386_s3 + $0x50] sm:$0xff]  ;;  %v886_v12 = vld [vmem:[%s4386_s3 + $0x58] sm:$0xff] }
  0x23   : > { %2648 = vmatmul.mubr.msk.bf16.gmra.mrb[4].mxu0 %vm388_vm0, %v339_v33  ;;  %2972 = vmatprep.subr.bf16.mxu0 %v2971_v4  ;;  %v2979_v10 = vpack.c.bf16 %v884_v9, %v883_v8  ;;  %v2983_v13 = vpack.c.bf16 %v886_v12, %v885_v11  ;;  %v887_v14 = vld [vmem:[%s4386_s3 + $0x60] sm:$0xff]  ;;  %v888_v15 = vld [vmem:[%s4386_s3 + $0x68] sm:$0xff] }
  0x24   : > { %2664 = vmatmul.mubr.msk.bf16.gmra.mrb[4].mxu1 %vm388_vm0, %v347_v34  ;;  %2651 = vmatprep.mubr.msk.bf16.mxu0 %vm388_vm0, %v340_v35  ;;  %v2987_v16 = vpack.c.bf16 %v888_v15, %v887_v14  ;;  %v3591_v17 = vld [vmem:[%s4389_s6] ss:$0 sm:$0xff] }
  0x25   : > { %2667 = vmatprep.mubr.msk.bf16.mxu1 %vm388_vm0, %v348_v36  ;;  %2680 = vmatpush3.bf16.msra.mxu1 %v3161_v31 }
  0x26   : > { %2681 = vmatprep.subr.bf16.mxu1 %v3162_v37  ;;  %2974 = vmatpush3.bf16.msra.mxu0 %v2971_v4 }
  0x27   : > { %2976 = vmatprep.subr.bf16.mxu0 %v2975_v7 }
  0x29   : > { %2682 = vmatpush3.bf16.msra.mxu1 %v3162_v37 }
  0x2a   : > { %2683 = vmatprep.subr.bf16.mxu1 %v3163_v46  ;;  %2978 = vmatpush3.bf16.msra.mxu0 %v2975_v7 }
  0x2b   : > { %2652 = vmatmul.mubr.msk.bf16.gmra.mrb[8].mxu0 %vm388_vm0, %v341_v47  ;;  %2980 = vmatprep.subr.bf16.mxu0 %v2979_v10 }
  0x2c   : > { %2668 = vmatmul.mubr.msk.bf16.gmra.mrb[8].mxu1 %vm388_vm0, %v349_v48  ;;  %2655 = vmatprep.mubr.msk.bf16.mxu0 %vm388_vm0, %v342_v49 }
  0x2d   : > { %2671 = vmatprep.mubr.msk.bf16.mxu1 %vm388_vm0, %v350_v50  ;;  %2684 = vmatpush3.bf16.msra.mxu1 %v3163_v46 }
  0x2e   : > { %2685 = vmatprep.subr.bf16.mxu1 %v3164_v51  ;;  %2982 = vmatpush3.bf16.msra.mxu0 %v2979_v10 }
  0x2f   : > { %2984 = vmatprep.subr.bf16.mxu0 %v2983_v13 }
  0x31   : > { %2686 = vmatpush3.bf16.msra.mxu1 %v3164_v51 }
  0x32   : > { %2687 = vmatprep.subr.bf16.mxu1 %v3165_v58  ;;  %2986 = vmatpush3.bf16.msra.mxu0 %v2983_v13 }
  0x33   : > { %2656 = vmatmul.mubr.msk.bf16.gmra.mrb[12].mxu0 %vm388_vm0, %v343_v56  ;;  %2988 = vmatprep.subr.bf16.mxu0 %v2987_v16 }
  0x34   : > { %2672 = vmatmul.mubr.msk.bf16.gmra.mrb[12].mxu1 %vm388_vm0, %v351_v57 }
  0x35   : > { %2688 = vmatpush3.bf16.msra.mxu1 %v3165_v58 }
  0x36   : > { %2689 = vmatprep.subr.bf16.mxu1 %v3166_v59  ;;  %2990 = vmatpush3.bf16.msra.mxu0 %v2987_v16 }
  0x39   : > { %2690 = vmatpush3.bf16.msra.mxu1 %v3166_v59 }
  0xee   : > { %v2645_v18 = vpop.f32.mrb[0].mxu0 }
  0xef   : > { %v2661_v19 = vpop.f32.mrb[0].mxu1  ;;  %v480_v20 = vadd.f32 %v2645_v18, %v3591_v17  ;;  %v471_v21 = vpop.f32.mrb[1].mxu0 }
  0xf0   : > { %v544_v22 = vadd.f32 %v2661_v19, %v3591_v17  ;;  %v535_v23 = vpop.f32.mrb[1].mxu1  ;;  %v472_v24 = vadd.f32 %v3591_v17, %v471_v21  ;;  %v2646_v25 = vpop.f32.mrb[2].mxu0 }
  0xf1   : > { %v536_v26 = vadd.f32 %v3591_v17, %v535_v23  ;;  %v2662_v27 = vpop.f32.mrb[2].mxu1  ;;  %v483_v28 = vadd.f32 %v2646_v25, %v3591_v17  ;;  %v474_v29 = vpop.f32.mrb[3].mxu0  ;;  %v600_v36 = vmax.f32 %v480_v20, 0.0 }
  0xf2   : > { %v616_v30 = vmax.f32 %v544_v22, 0.0  ;;  %v547_v31 = vadd.f32 %v2662_v27, %v3591_v17  ;;  %v538_v32 = vpop.f32.mrb[3].mxu1  ;;  %v475_v33 = vadd.f32 %v3591_v17, %v474_v29  ;;  %v598_v39 = vmax.f32 %v472_v24, 0.0 }
  0xf3   : > { %v614_v34 = vmax.f32 %v536_v26, 0.0  ;;  %v539_v35 = vadd.f32 %v3591_v17, %v538_v32  ;;  %v601_v37 = vmax.f32 %v483_v28, 0.0 }
  0xf4   : > { %v617_v38 = vmax.f32 %v547_v31, 0.0  ;;  %v599_v40 = vmax.f32 %v475_v33, 0.0 }
  0xf5   : > { %v615_v41 = vmax.f32 %v539_v35, 0.0  ;;  %v631_v42 = vpack.c.bf16 %v601_v37, %v600_v36 }
  0xf6   : > { %v3601_v43 = vpack.c.bf16 %v617_v38, %v616_v30  ;;  %v630_v44 = vpack.c.bf16 %v599_v40, %v598_v39  ;;  %v2649_v45 = vpop.f32.mrb[4].mxu0 }
  0xf7   : > { %v3603_v46 = vpack.c.bf16 %v615_v41, %v614_v34  ;;  %v2665_v47 = vpop.f32.mrb[4].mxu1  ;;  %v496_v48 = vadd.f32 %v2649_v45, %v3591_v17  ;;  %v487_v49 = vpop.f32.mrb[5].mxu0 }
  0xf8   : > { %v560_v50 = vadd.f32 %v2665_v47, %v3591_v17  ;;  %v551_v51 = vpop.f32.mrb[5].mxu1  ;;  %v488_v52 = vadd.f32 %v3591_v17, %v487_v49  ;;  %v2650_v53 = vpop.f32.mrb[6].mxu0  ;;  %2691 = vmatprep.mubr.bf16.mxu1 %v630_v44 }
  0xf9   : > { %v552_v54 = vadd.f32 %v3591_v17, %v551_v51  ;;  %v2666_v55 = vpop.f32.mrb[6].mxu1  ;;  %v604_v56 = vmax.f32 %v496_v48, 0.0  ;;  %v499_v57 = vadd.f32 %v2650_v53, %v3591_v17  ;;  %v490_v58 = vpop.f32.mrb[7].mxu0  ;;  %2692 = vmatmul.mubr.bf16.vlgmr.msra.gmra.mrb[16].mxu1 %v631_v42 }
  0xfa   : > { %v620_v59 = vmax.f32 %v560_v50, 0.0  ;;  %v563_v60 = vadd.f32 %v2666_v55, %v3591_v17  ;;  %v554_v61 = vpop.f32.mrb[7].mxu1  ;;  %v602_v62 = vmax.f32 %v488_v52, 0.0  ;;  %v491_v63 = vadd.f32 %v3591_v17, %v490_v58 }
  0xfb   : > { %v618_v0 = vmax.f32 %v552_v54, 0.0  ;;  %v555_v1 = vadd.f32 %v3591_v17, %v554_v61  ;;  %v605_v2 = vmax.f32 %v499_v57, 0.0 }
  0xfc   : > { %v621_v3 = vmax.f32 %v563_v60, 0.0  ;;  %v603_v4 = vmax.f32 %v491_v63, 0.0 }
  0xfd   : > { %v619_v5 = vmax.f32 %v555_v1, 0.0  ;;  %v633_v6 = vpack.c.bf16 %v605_v2, %v604_v56 }
  0xfe   : > { %v3613_v7 = vpack.c.bf16 %v621_v3, %v620_v59  ;;  %v632_v8 = vpack.c.bf16 %v603_v4, %v602_v62  ;;  %v2653_v9 = vpop.f32.mrb[8].mxu0 }
  0xff   : > { %v3615_v10 = vpack.c.bf16 %v619_v5, %v618_v0  ;;  %v2669_v11 = vpop.f32.mrb[8].mxu1  ;;  %v512_v12 = vadd.f32 %v2653_v9, %v3591_v17  ;;  %v503_v13 = vpop.f32.mrb[9].mxu0  ;;  %v890_v5 = vld [vmem:[%s4386_s3 + $0x78] sm:$0xff] }
 0x100   : > { %v576_v14 = vadd.f32 %v2669_v11, %v3591_v17  ;;  %v567_v15 = vpop.f32.mrb[9].mxu1  ;;  %v504_v16 = vadd.f32 %v3591_v17, %v503_v13  ;;  %v2654_v18 = vpop.f32.mrb[10].mxu0  ;;  %2695 = vmatprep.mubr.bf16.mxu1 %v632_v8  ;;  %v3652_v8 = vld [vmem:[%s4389_s6 + $0x1] ss:$0 sm:$0xff]  ;;  %v1391_v11 = vld [vmem:[%s4387_s4 + $0x10] sm:$0xff] }
 0x101   : > { %v568_v19 = vadd.f32 %v3591_v17, %v567_v15  ;;  %v2670_v20 = vpop.f32.mrb[10].mxu1  ;;  %v608_v21 = vmax.f32 %v512_v12, 0.0  ;;  %v515_v22 = vadd.f32 %v2654_v18, %v3591_v17  ;;  %v506_v23 = vpop.f32.mrb[11].mxu0  ;;  %2696 = vmatmul.mubr.bf16.gmra.mrb[20].mxu1 %v633_v6  ;;  %v1392_v12 = vld [vmem:[%s4387_s4 + $0x18] sm:$0xff]  ;;  %v1148_v15 = vld [vmem:[%s4388_s5] sm:$0xff]  ;;  %v1150_v18 = vld [vmem:[%s4388_s5 + $0x10] sm:$0xff] }
 0x102   : > { %v624_v24 = vmax.f32 %v576_v14, 0.0  ;;  %v579_v25 = vadd.f32 %v2670_v20, %v3591_v17  ;;  %v570_v26 = vpop.f32.mrb[11].mxu1  ;;  %v606_v27 = vmax.f32 %v504_v16, 0.0  ;;  %v507_v28 = vadd.f32 %v3591_v17, %v506_v23  ;;  %v1149_v16 = vld [vmem:[%s4388_s5 + $0x8] sm:$0xff] }
 0x103   : > { %v622_v29 = vmax.f32 %v568_v19, 0.0  ;;  %v571_v30 = vadd.f32 %v3591_v17, %v570_v26  ;;  %v609_v31 = vmax.f32 %v515_v22, 0.0  ;;  %v2995_v20 = vpack.c.bf16 %v1149_v16, %v1148_v15  ;;  %v1153_v26 = vld [vmem:[%s4388_s5 + $0x28] sm:$0xff]  ;;  %v1163_v15 = vld [vmem:[%s4388_s5 + $0x78] sm:$0xff] }
 0x104   : > { %v625_v32 = vmax.f32 %v579_v25, 0.0  ;;  %v607_v33 = vmax.f32 %v507_v28, 0.0  ;;  %v3031_v23 = vpack.c.bf16 %v1392_v12, %v1391_v11  ;;  %v1152_v25 = vld [vmem:[%s4388_s5 + $0x20] sm:$0xff]  ;;  %v1404_v12 = vld [vmem:[%s4387_s4 + $0x78] sm:$0xff] }
 0x105   : > { %v623_v34 = vmax.f32 %v571_v30, 0.0  ;;  %v635_v35 = vpack.c.bf16 %v609_v31, %v608_v21  ;;  %v1151_v21 = vld [vmem:[%s4388_s5 + $0x18] sm:$0xff]  ;;  %v1393_v28 = vld [vmem:[%s4387_s4 + $0x20] sm:$0xff]  ;;  %2996 = vmatprep.subr.bf16.mxu1 %v2995_v20  ;;  %v3003_v30 = vpack.c.bf16 %v1153_v26, %v1152_v25 }
 0x106   : > { %v643_v36 = vpack.c.bf16 %v625_v32, %v624_v24  ;;  %v634_v37 = vpack.c.bf16 %v607_v33, %v606_v27  ;;  %v2657_v38 = vpop.f32.mrb[12].mxu0  ;;  %v2999_v24 = vpack.c.bf16 %v1151_v21, %v1150_v18  ;;  %2998 = vmatpush3.bf16.msra.mxu1 %v2995_v20 }
 0x107   : > { %v642_v39 = vpack.c.bf16 %v623_v34, %v622_v29  ;;  %v2673_v40 = vpop.f32.mrb[12].mxu1  ;;  %v528_v41 = vadd.f32 %v2657_v38, %v3591_v17  ;;  %v519_v42 = vpop.f32.mrb[13].mxu0  ;;  %v1394_v29 = vld [vmem:[%s4387_s4 + $0x28] sm:$0xff]  ;;  %v1395_v34 = vld [vmem:[%s4387_s4 + $0x30] sm:$0xff]  ;;  %v1155_v38 = vld [vmem:[%s4388_s5 + $0x38] sm:$0xff] }
 0x108   : > { %v592_v44 = vadd.f32 %v2673_v40, %v3591_v17  ;;  %v583_v45 = vpop.f32.mrb[13].mxu1  ;;  %v520_v47 = vadd.f32 %v3591_v17, %v519_v42  ;;  %v2658_v48 = vpop.f32.mrb[14].mxu0  ;;  %2699 = vmatprep.mubr.bf16.mxu1 %v634_v37  ;;  %v3035_v33 = vpack.c.bf16 %v1394_v29, %v1393_v28  ;;  %3000 = vmatprep.subr.bf16.mxu1 %v2999_v24  ;;  %v1154_v37 = vld [vmem:[%s4388_s5 + $0x30] sm:$0xff] }
 0x109   : > { %v584_v49 = vadd.f32 %v3591_v17, %v583_v45  ;;  %v2674_v50 = vpop.f32.mrb[14].mxu1  ;;  %v612_v51 = vmax.f32 %v528_v41, 0.0  ;;  %v531_v52 = vadd.f32 %v2658_v48, %v3591_v17  ;;  %v522_v53 = vpop.f32.mrb[15].mxu0  ;;  %2700 = vmatmul.mubr.bf16.gmra.mrb[24].mxu1 %v635_v35  ;;  %v3007_v45 = vpack.c.bf16 %v1155_v38, %v1154_v37  ;;  %v1157_v48 = vld [vmem:[%s4388_s5 + $0x48] sm:$0xff] }
 0x10a   : > { %v628_v54 = vmax.f32 %v592_v44, 0.0  ;;  %v595_v55 = vadd.f32 %v2674_v50, %v3591_v17  ;;  %v586_v56 = vpop.f32.mrb[15].mxu1  ;;  %v610_v57 = vmax.f32 %v520_v47, 0.0  ;;  %v523_v58 = vadd.f32 %v3591_v17, %v522_v53  ;;  %3002 = vmatpush3.bf16.msra.mxu1 %v2999_v24  ;;  %v1156_v47 = vld [vmem:[%s4388_s5 + $0x40] sm:$0xff] }
 0x10b   : > { %v626_v59 = vmax.f32 %v584_v49, 0.0  ;;  %v587_v60 = vadd.f32 %v3591_v17, %v586_v56  ;;  %v613_v61 = vmax.f32 %v531_v52, 0.0  ;;  %v889_v17 = vld [vmem:[%s4386_s3 + $0x70] sm:$0xff]  ;;  %3004 = vmatprep.subr.bf16.mxu1 %v3003_v30  ;;  %v1397_v50 = vld [vmem:[%s4387_s4 + $0x40] sm:$0xff]  ;;  %v3011_v52 = vpack.c.bf16 %v1157_v48, %v1156_v47 }
 0x10c   : > { %v629_v62 = vmax.f32 %v595_v55, 0.0  ;;  %v611_v63 = vmax.f32 %v523_v58, 0.0  ;;  %v2991_v6 = vpack.c.bf16 %v890_v5, %v889_v17  ;;  %v1399_v56 = vld [vmem:[%s4387_s4 + $0x50] sm:$0xff]  ;;  %v1400_v58 = vld [vmem:[%s4387_s4 + $0x58] sm:$0xff]  ;;  %v1401_v5 = vld [vmem:[%s4387_s4 + $0x60] sm:$0xff] }
 0x10d   : > { %v627_v0 = vmax.f32 %v587_v60, 0.0  ;;  %v637_v1 = vpack.c.bf16 %v613_v61, %v612_v51  ;;  %v1398_v51 = vld [vmem:[%s4387_s4 + $0x48] sm:$0xff]  ;;  %v1159_v60 = vld [vmem:[%s4388_s5 + $0x58] sm:$0xff] }
 0x10e   : > { %v645_v2 = vpack.c.bf16 %v629_v62, %v628_v54  ;;  %v636_v3 = vpack.c.bf16 %v611_v63, %v610_v57  ;;  %2992 = vmatprep.subr.bf16.mxu0 %v2991_v6  ;;  %3006 = vmatpush3.bf16.msra.mxu1 %v3003_v30  ;;  %v3043_v55 = vpack.c.bf16 %v1398_v51, %v1397_v50 }
 0x10f   : > { %v644_v4 = vpack.c.bf16 %v627_v0, %v626_v59  ;;  %2994 = vmatpush3.bf16.msra.mxu0 %v2991_v6  ;;  %3008 = vmatprep.subr.bf16.mxu1 %v3007_v45  ;;  %v1158_v59 = vld [vmem:[%s4388_s5 + $0x50] sm:$0xff]  ;;  %v1402_v6 = vld [vmem:[%s4387_s4 + $0x68] sm:$0xff] }
 0x110   : > { %2703 = vmatprep.mubr.bf16.mxu1 %v636_v3  ;;  %v1160_v3 = vld [vmem:[%s4388_s5 + $0x60] sm:$0xff] }
 0x111   : > { %2704 = vmatmul.mubr.bf16.gmra.mrb[28].mxu1 %v637_v1  ;;  %v3047_v1 = vpack.c.bf16 %v1400_v58, %v1399_v56 }
 0x112   : > { %2707 = vmatprep.mubr.bf16.mxu1 %v3603_v46  ;;  %v1390_v46 = vld [vmem:[%s4387_s4 + $0x8] sm:$0xff]  ;;  %3010 = vmatpush3.bf16.msra.mxu1 %v3007_v45 }
 0x113   : > { %3012 = vmatprep.subr.bf16.mxu1 %v3011_v52 }
 0x116   : > { %3014 = vmatpush3.bf16.msra.mxu1 %v3011_v52 }
 0x119   : > { %2708 = vmatmul.mubr.bf16.gmra.mrb[32].mxu1 %v3601_v43  ;;  %v1389_v43 = vld [vmem:[%s4387_s4] sm:$0xff] }
 0x11a   : > { %2711 = vmatprep.mubr.bf16.mxu1 %v3615_v10 }
 0x121   : > { %2712 = vmatmul.mubr.bf16.gmra.mrb[36].mxu1 %v3613_v7  ;;  %v3027_v7 = vpack.c.bf16 %v1390_v46, %v1389_v43 }
 0x122   : > { %2715 = vmatprep.mubr.bf16.mxu1 %v642_v39 }
 0x123   : > { %3028 = vmatprep.subr.bf16.mxu0 %v3027_v7 }
 0x129   : > { %2716 = vmatmul.mubr.bf16.gmra.mrb[40].mxu1 %v643_v36  ;;  %v1396_v36 = vld [vmem:[%s4387_s4 + $0x38] sm:$0xff] }
 0x12a   : > { %2719 = vmatprep.mubr.bf16.mxu1 %v644_v4  ;;  %v3039_v44 = vpack.c.bf16 %v1396_v36, %v1395_v34  ;;  %v1161_v4 = vld [vmem:[%s4388_s5 + $0x68] sm:$0xff] }
 0x12b   : > { %v3019_v43 = vpack.c.bf16 %v1161_v4, %v1160_v3 }
 0x131   : > { %2720 = vmatmul.mubr.bf16.gmra.mrb[44].mxu1 %v645_v2  ;;  %v3015_v2 = vpack.c.bf16 %v1159_v60, %v1158_v59 }
 0x133   : > { %3016 = vmatprep.subr.bf16.mxu1 %v3015_v2 }
 0x134   : > { %3018 = vmatpush3.bf16.msra.mxu1 %v3015_v2 }
 0x135   : > { %3020 = vmatprep.subr.bf16.mxu1 %v3019_v43 }
 0x138   : > { %3022 = vmatpush3.bf16.msra.mxu1 %v3019_v43 }
 0x1cc   : > { %v2693_v9 = vpop.f32.mrb[16].mxu1 }
 0x1cd   : > { %v748_v10 = vpop.f32.mrb[17].mxu1  ;;  %v3686_v27 = vadd.f32 %v2693_v9, %v3652_v8  ;;  %v3051_v9 = vpack.c.bf16 %v1402_v6, %v1401_v5 }
 0x1ce   : > { %v3661_v13 = vadd.f32 %v3652_v8, %v748_v10  ;;  %v2694_v14 = vpop.f32.mrb[18].mxu1  ;;  %v1403_v10 = vld [vmem:[%s4387_s4 + $0x70] sm:$0xff] }
 0x1cf   : > { %v751_v19 = vpop.f32.mrb[19].mxu1  ;;  %v3697_v31 = vadd.f32 %v2694_v14, %v3652_v8  ;;  %v1162_v14 = vld [vmem:[%s4388_s5 + $0x70] sm:$0xff]  ;;  %v3055_v21 = vpack.c.bf16 %v1404_v12, %v1403_v10 }
 0x1d0   : > { %v3676_v22 = vadd.f32 %v3652_v8, %v751_v19  ;;  %2755 = vmatprep.mubr.f32.mxu0 %v3661_v13 }
 0x1d2   : > { %2756 = vmatmul.mubr.f32.vlgmr.msra.gmra.mrb[16].mxu0 %v3676_v22 }
 0x1d3   : > { %2758 = vmatprep.mubr.f32.mxu0 %v3686_v27  ;;  %3030 = vmatpush3.bf16.msra.mxu0 %v3027_v7 }
 0x1d4   : > { %v2697_v32 = vpop.f32.mrb[20].mxu1  ;;  %3032 = vmatprep.subr.bf16.mxu0 %v3031_v23 }
 0x1d5   : > { %v764_v35 = vpop.f32.mrb[21].mxu1  ;;  %v3726_v49 = vadd.f32 %v2697_v32, %v3652_v8 }
 0x1d6   : > { %v3712_v39 = vadd.f32 %v3652_v8, %v764_v35  ;;  %v2698_v40 = vpop.f32.mrb[22].mxu1  ;;  %2759 = vmatmul.mubr.f32.gmra.mrb[18].mxu0 %v3697_v31 }
 0x1d7   : > { %v767_v41 = vpop.f32.mrb[23].mxu1  ;;  %3034 = vmatpush3.bf16.msra.mxu0 %v3031_v23  ;;  %v3737_v53 = vadd.f32 %v2698_v40, %v3652_v8  ;;  %v3023_v23 = vpack.c.bf16 %v1163_v15, %v1162_v14 }
 0x1d8   : > { %v3716_v42 = vadd.f32 %v3652_v8, %v767_v41  ;;  %2761 = vmatprep.mubr.f32.mxu0 %v3712_v39  ;;  %3036 = vmatprep.subr.bf16.mxu0 %v3035_v33 }
 0x1d9   : > { %3024 = vmatprep.subr.bf16.mxu1 %v3023_v23 }
 0x1da   : > { %2762 = vmatmul.mubr.f32.gmra.mrb[20].mxu0 %v3716_v42  ;;  %3026 = vmatpush3.bf16.msra.mxu1 %v3023_v23 }
 0x1db   : > { %2764 = vmatprep.mubr.f32.mxu0 %v3726_v49  ;;  %3038 = vmatpush3.bf16.msra.mxu0 %v3035_v33 }
 0x1dc   : > { %v2701_v54 = vpop.f32.mrb[24].mxu1  ;;  %3040 = vmatprep.subr.bf16.mxu0 %v3039_v44 }
 0x1dd   : > { %v780_v57 = vpop.f32.mrb[25].mxu1  ;;  %v3766_v17 = vadd.f32 %v2701_v54, %v3652_v8 }
 0x1de   : > { %v3752_v61 = vadd.f32 %v3652_v8, %v780_v57  ;;  %v2702_v62 = vpop.f32.mrb[26].mxu1  ;;  %2765 = vmatmul.mubr.f32.gmra.mrb[22].mxu0 %v3737_v53 }
 0x1df   : > { %v783_v63 = vpop.f32.mrb[27].mxu1  ;;  %3042 = vmatpush3.bf16.msra.mxu0 %v3039_v44  ;;  %v3777_v46 = vadd.f32 %v2702_v62, %v3652_v8 }
 0x1e0   : > { %v3756_v0 = vadd.f32 %v3652_v8, %v783_v63  ;;  %2767 = vmatprep.mubr.f32.mxu0 %v3752_v61  ;;  %3044 = vmatprep.subr.bf16.mxu0 %v3043_v55 }
 0x1e2   : > { %2768 = vmatmul.mubr.f32.gmra.mrb[24].mxu0 %v3756_v0 }
 0x1e3   : > { %2770 = vmatprep.mubr.f32.mxu0 %v3766_v17  ;;  %3046 = vmatpush3.bf16.msra.mxu0 %v3043_v55 }
 0x1e4   : > { %v2705_v7 = vpop.f32.mrb[28].mxu1  ;;  %3048 = vmatprep.subr.bf16.mxu0 %v3047_v1 }
 0x1e5   : > { %v796_v11 = vpop.f32.mrb[29].mxu1  ;;  %v3800_v24 = vadd.f32 %v2705_v7, %v3652_v8 }
 0x1e6   : > { %v3792_v16 = vadd.f32 %v3652_v8, %v796_v11  ;;  %v2706_v18 = vpop.f32.mrb[30].mxu1  ;;  %2771 = vmatmul.mubr.f32.gmra.mrb[26].mxu0 %v3777_v46 }
 0x1e7   : > { %v799_v19 = vpop.f32.mrb[31].mxu1  ;;  %3050 = vmatpush3.bf16.msra.mxu0 %v3047_v1  ;;  %v3805_v25 = vadd.f32 %v2706_v18, %v3652_v8 }
 0x1e8   : > { %v3796_v20 = vadd.f32 %v3652_v8, %v799_v19  ;;  %2773 = vmatprep.mubr.f32.mxu0 %v3792_v16  ;;  %3052 = vmatprep.subr.bf16.mxu0 %v3051_v9 }
 0x1ea   : > { %2774 = vmatmul.mubr.f32.gmra.mrb[28].mxu0 %v3796_v20 }
 0x1eb   : > { %2776 = vmatprep.mubr.f32.mxu0 %v3800_v24  ;;  %3054 = vmatpush3.bf16.msra.mxu0 %v3051_v9 }
 0x1ec   : > { %v2709_v26 = vpop.f32.mrb[32].mxu1  ;;  %3056 = vmatprep.subr.bf16.mxu0 %v3055_v21 }
 0x1ed   : > { %v812_v28 = vpop.f32.mrb[33].mxu1  ;;  %v821_v34 = vadd.f32 %v2709_v26, %v3652_v8 }
 0x1ee   : > { %v3808_v29 = vadd.f32 %v3652_v8, %v812_v28  ;;  %v2710_v30 = vpop.f32.mrb[34].mxu1  ;;  %2777 = vmatmul.mubr.f32.gmra.mrb[30].mxu0 %v3805_v25 }
 0x1ef   : > { %v815_v32 = vpop.f32.mrb[35].mxu1  ;;  %3058 = vmatpush3.bf16.msra.mxu0 %v3055_v21  ;;  %v824_v35 = vadd.f32 %v2710_v30, %v3652_v8 }
 0x1f0   : > { %v816_v33 = vadd.f32 %v3652_v8, %v815_v32  ;;  %2779 = vmatprep.mubr.f32.mxu0 %v3808_v29 }
 0x1f2   : > { %2780 = vmatmul.mubr.f32.gmra.mrb[32].mxu0 %v816_v33 }
 0x1f3   : > { %2782 = vmatprep.mubr.f32.mxu0 %v821_v34 }
 0x1f4   : > { %v2713_v36 = vpop.f32.mrb[36].mxu1 }
 0x1f5   : > { %v828_v37 = vpop.f32.mrb[37].mxu1  ;;  %v837_v45 = vadd.f32 %v2713_v36, %v3652_v8 }
 0x1f6   : > { %v829_v38 = vadd.f32 %v3652_v8, %v828_v37  ;;  %v2714_v40 = vpop.f32.mrb[38].mxu1  ;;  %2783 = vmatmul.mubr.f32.gmra.mrb[34].mxu0 %v824_v35 }
 0x1f7   : > { %v831_v41 = vpop.f32.mrb[39].mxu1  ;;  %v840_v47 = vadd.f32 %v2714_v40, %v3652_v8 }
 0x1f8   : > { %v832_v44 = vadd.f32 %v3652_v8, %v831_v41  ;;  %2785 = vmatprep.mubr.f32.mxu0 %v829_v38 }
 0x1fa   : > { %2786 = vmatmul.mubr.f32.gmra.mrb[36].mxu0 %v832_v44 }
 0x1fb   : > { %2788 = vmatprep.mubr.f32.mxu0 %v837_v45 }
 0x1fc   : > { %v2717_v48 = vpop.f32.mrb[40].mxu1 }
 0x1fd   : > { %v844_v50 = vpop.f32.mrb[41].mxu1  ;;  %v853_v56 = vadd.f32 %v2717_v48, %v3652_v8 }
 0x1fe   : > { %v845_v51 = vadd.f32 %v3652_v8, %v844_v50  ;;  %v2718_v52 = vpop.f32.mrb[42].mxu1  ;;  %2789 = vmatmul.mubr.f32.gmra.mrb[38].mxu0 %v840_v47 }
 0x1ff   : > { %v847_v54 = vpop.f32.mrb[43].mxu1  ;;  %v856_v57 = vadd.f32 %v2718_v52, %v3652_v8 }
 0x200   : > { %v848_v55 = vadd.f32 %v3652_v8, %v847_v54  ;;  %2791 = vmatprep.mubr.f32.mxu0 %v845_v51 }
 0x202   : > { %2792 = vmatmul.mubr.f32.gmra.mrb[40].mxu0 %v848_v55 }
 0x203   : > { %2794 = vmatprep.mubr.f32.mxu0 %v853_v56 }
 0x204   : > { %v2721_v58 = vpop.f32.mrb[44].mxu1 }
 0x205   : > { %v860_v59 = vpop.f32.mrb[45].mxu1  ;;  %v869_v2 = vadd.f32 %v2721_v58, %v3652_v8 }
 0x206   : > { %v861_v60 = vadd.f32 %v3652_v8, %v860_v59  ;;  %v2722_v62 = vpop.f32.mrb[46].mxu1  ;;  %2795 = vmatmul.mubr.f32.gmra.mrb[42].mxu0 %v856_v57 }
 0x207   : > { %v863_v63 = vpop.f32.mrb[47].mxu1  ;;  %v872_v3 = vadd.f32 %v2722_v62, %v3652_v8 }
 0x208   : > { %v864_v1 = vadd.f32 %v3652_v8, %v863_v63  ;;  %2797 = vmatprep.mubr.f32.mxu0 %v861_v60 }
 0x20a   : > { %2798 = vmatmul.mubr.f32.gmra.mrb[44].mxu0 %v864_v1 }
 0x20b   : > { %2800 = vmatprep.mubr.f32.mxu0 %v869_v2 }
 0x20e   : > { %2801 = vmatmul.mubr.f32.gmra.mrb[46].mxu0 %v872_v3 }
 0x20f   : > { %2915 = vmatprep.mubr.f32.mxu0 %v3661_v13 }
 0x212   : > { %2916 = vmatmul.mubr.f32.vlgmr.msra.gmra.mrb[48].mxu0 %v3676_v22 }
 0x213   : > { %2918 = vmatprep.mubr.f32.mxu0 %v3686_v27 }
 0x216   : > { %2919 = vmatmul.mubr.f32.gmra.mrb[50].mxu0 %v3697_v31 }
 0x217   : > { %2921 = vmatprep.mubr.f32.mxu0 %v3712_v39 }
 0x21a   : > { %2922 = vmatmul.mubr.f32.gmra.mrb[52].mxu0 %v3716_v42 }
 0x21b   : > { %2924 = vmatprep.mubr.f32.mxu0 %v3726_v49 }
 0x21e   : > { %2925 = vmatmul.mubr.f32.gmra.mrb[54].mxu0 %v3737_v53 }
 0x21f   : > { %2927 = vmatprep.mubr.f32.mxu0 %v3752_v61 }
 0x222   : > { %2928 = vmatmul.mubr.f32.gmra.mrb[56].mxu0 %v3756_v0 }
 0x223   : > { %2930 = vmatprep.mubr.f32.mxu0 %v3766_v17 }
 0x226   : > { %2931 = vmatmul.mubr.f32.gmra.mrb[58].mxu0 %v3777_v46 }
 0x227   : > { %2933 = vmatprep.mubr.f32.mxu0 %v3792_v16 }
 0x22a   : > { %2934 = vmatmul.mubr.f32.gmra.mrb[60].mxu0 %v3796_v20 }
 0x22b   : > { %2936 = vmatprep.mubr.f32.mxu0 %v3800_v24 }
 0x22e   : > { %2937 = vmatmul.mubr.f32.gmra.mrb[62].mxu0 %v3805_v25 }
 0x22f   : > { %2939 = vmatprep.mubr.f32.mxu0 %v3808_v29 }
 0x232   : > { %2940 = vmatmul.mubr.f32.gmra.mrb[64].mxu0 %v816_v33 }
 0x233   : > { %2942 = vmatprep.mubr.f32.mxu0 %v821_v34 }
 0x236   : > { %2943 = vmatmul.mubr.f32.gmra.mrb[66].mxu0 %v824_v35 }
 0x237   : > { %2945 = vmatprep.mubr.f32.mxu0 %v829_v38 }
 0x23a   : > { %2946 = vmatmul.mubr.f32.gmra.mrb[68].mxu0 %v832_v44 }
 0x23b   : > { %2948 = vmatprep.mubr.f32.mxu0 %v837_v45 }
 0x23e   : > { %2949 = vmatmul.mubr.f32.gmra.mrb[70].mxu0 %v840_v47 }
 0x23f   : > { %2951 = vmatprep.mubr.f32.mxu0 %v845_v51 }
 0x242   : > { %2952 = vmatmul.mubr.f32.gmra.mrb[72].mxu0 %v848_v55 }
 0x243   : > { %2954 = vmatprep.mubr.f32.mxu0 %v853_v56 }
 0x246   : > { %2955 = vmatmul.mubr.f32.gmra.mrb[74].mxu0 %v856_v57 }
 0x247   : > { %2957 = vmatprep.mubr.f32.mxu0 %v861_v60 }
 0x24a   : > { %2958 = vmatmul.mubr.f32.gmra.mrb[76].mxu0 %v864_v1 }
 0x24b   : > { %2960 = vmatprep.mubr.f32.mxu0 %v869_v2 }
 0x24e   : > { %2961 = vmatmul.mubr.f32.gmra.mrb[78].mxu0 %v872_v3 }
 0x2a5   : > { %v2757_v8 = vpop.f32.mrb[16].mxu0 }
 0x2a6   : > { %v957_v13 = vpop.f32.mrb[17].mxu0  ;;  %v1117_v27 = vmul.f32 %v2757_v8, %v2757_v8 }
 0x2a7   : > { %v1116_v22 = vmul.f32 %v957_v13, %v957_v13 }
 0x2a9   : > { %v2760_v31 = vpop.f32.mrb[18].mxu0  ;;  %2835 = vmatprep.mubr.f32.mxu1 %v1116_v22 }
 0x2aa   : > { %v967_v39 = vpop.f32.mrb[19].mxu0  ;;  %2836 = vmatmul.mubr.f32.vlgmr.msra.gmra.mrb[48].mxu1 %v1117_v27  ;;  %v1119_v49 = vmul.f32 %v2760_v31, %v2760_v31 }
 0x2ab   : > { %v1118_v42 = vmul.f32 %v967_v39, %v967_v39 }
 0x2ad   : > { %v2763_v53 = vpop.f32.mrb[20].mxu0  ;;  %2838 = vmatprep.mubr.f32.mxu1 %v1118_v42 }
 0x2ae   : > { %v977_v61 = vpop.f32.mrb[21].mxu0  ;;  %2839 = vmatmul.mubr.f32.gmra.mrb[50].mxu1 %v1119_v49  ;;  %v1121_v4 = vmul.f32 %v2763_v53, %v2763_v53 }
 0x2af   : > { %v1120_v0 = vmul.f32 %v977_v61, %v977_v61 }
 0x2b1   : > { %v2766_v17 = vpop.f32.mrb[22].mxu0  ;;  %2841 = vmatprep.mubr.f32.mxu1 %v1120_v0 }
 0x2b2   : > { %v987_v5 = vpop.f32.mrb[23].mxu0  ;;  %2842 = vmatmul.mubr.f32.gmra.mrb[52].mxu1 %v1121_v4  ;;  %v1123_v43 = vmul.f32 %v2766_v17, %v2766_v17 }
 0x2b3   : > { %v1122_v6 = vmul.f32 %v987_v5, %v987_v5 }
 0x2b5   : > { %v2769_v46 = vpop.f32.mrb[24].mxu0  ;;  %2844 = vmatprep.mubr.f32.mxu1 %v1122_v6 }
 0x2b6   : > { %v997_v7 = vpop.f32.mrb[25].mxu0  ;;  %2845 = vmatmul.mubr.f32.gmra.mrb[54].mxu1 %v1123_v43  ;;  %v1125_v10 = vmul.f32 %v2769_v46, %v2769_v46 }
 0x2b7   : > { %v1124_v9 = vmul.f32 %v997_v7, %v997_v7 }
 0x2b9   : > { %v2772_v11 = vpop.f32.mrb[26].mxu0  ;;  %2847 = vmatprep.mubr.f32.mxu1 %v1124_v9 }
 0x2ba   : > { %v1007_v12 = vpop.f32.mrb[27].mxu0  ;;  %2848 = vmatmul.mubr.f32.gmra.mrb[56].mxu1 %v1125_v10  ;;  %v1127_v15 = vmul.f32 %v2772_v11, %v2772_v11 }
 0x2bb   : > { %v1126_v14 = vmul.f32 %v1007_v12, %v1007_v12 }
 0x2bd   : > { %v2775_v16 = vpop.f32.mrb[28].mxu0  ;;  %2850 = vmatprep.mubr.f32.mxu1 %v1126_v14 }
 0x2be   : > { %v1017_v18 = vpop.f32.mrb[29].mxu0  ;;  %2851 = vmatmul.mubr.f32.gmra.mrb[58].mxu1 %v1127_v15  ;;  %v1129_v20 = vmul.f32 %v2775_v16, %v2775_v16 }
 0x2bf   : > { %v1128_v19 = vmul.f32 %v1017_v18, %v1017_v18 }
 0x2c1   : > { %v2778_v21 = vpop.f32.mrb[30].mxu0  ;;  %2853 = vmatprep.mubr.f32.mxu1 %v1128_v19 }
 0x2c2   : > { %v1027_v23 = vpop.f32.mrb[31].mxu0  ;;  %2854 = vmatmul.mubr.f32.gmra.mrb[60].mxu1 %v1129_v20  ;;  %v1131_v25 = vmul.f32 %v2778_v21, %v2778_v21 }
 0x2c3   : > { %v1130_v24 = vmul.f32 %v1027_v23, %v1027_v23 }
 0x2c5   : > { %v2781_v26 = vpop.f32.mrb[32].mxu0  ;;  %2856 = vmatprep.mubr.f32.mxu1 %v1130_v24  ;;  %v3891_v24 = vld [vmem:[%s4389_s6 + $0x2] ss:$0 sm:$0xff] }
 0x2c6   : > { %v1037_v28 = vpop.f32.mrb[33].mxu0  ;;  %2857 = vmatmul.mubr.f32.gmra.mrb[62].mxu1 %v1131_v25  ;;  %v1133_v30 = vmul.f32 %v2781_v26, %v2781_v26 }
 0x2c7   : > { %v1132_v29 = vmul.f32 %v1037_v28, %v1037_v28 }
 0x2c9   : > { %v2784_v32 = vpop.f32.mrb[34].mxu0  ;;  %2859 = vmatprep.mubr.f32.mxu1 %v1132_v29 }
 0x2ca   : > { %v1047_v33 = vpop.f32.mrb[35].mxu0  ;;  %2860 = vmatmul.mubr.f32.gmra.mrb[64].mxu1 %v1133_v30  ;;  %v1135_v35 = vmul.f32 %v2784_v32, %v2784_v32 }
 0x2cb   : > { %v1134_v34 = vmul.f32 %v1047_v33, %v1047_v33 }
 0x2cd   : > { %v2787_v36 = vpop.f32.mrb[36].mxu0  ;;  %2862 = vmatprep.mubr.f32.mxu1 %v1134_v34 }
 0x2ce   : > { %v1057_v37 = vpop.f32.mrb[37].mxu0  ;;  %2863 = vmatmul.mubr.f32.gmra.mrb[66].mxu1 %v1135_v35  ;;  %v1137_v40 = vmul.f32 %v2787_v36, %v2787_v36 }
 0x2cf   : > { %v1136_v38 = vmul.f32 %v1057_v37, %v1057_v37 }
 0x2d1   : > { %v2790_v41 = vpop.f32.mrb[38].mxu0  ;;  %2865 = vmatprep.mubr.f32.mxu1 %v1136_v38 }
 0x2d2   : > { %v1067_v44 = vpop.f32.mrb[39].mxu0  ;;  %2866 = vmatmul.mubr.f32.gmra.mrb[68].mxu1 %v1137_v40  ;;  %v1139_v47 = vmul.f32 %v2790_v41, %v2790_v41 }
 0x2d3   : > { %v1138_v45 = vmul.f32 %v1067_v44, %v1067_v44 }
 0x2d5   : > { %v2793_v48 = vpop.f32.mrb[40].mxu0  ;;  %2868 = vmatprep.mubr.f32.mxu1 %v1138_v45 }
 0x2d6   : > { %v1077_v50 = vpop.f32.mrb[41].mxu0  ;;  %2869 = vmatmul.mubr.f32.gmra.mrb[70].mxu1 %v1139_v47  ;;  %v1141_v52 = vmul.f32 %v2793_v48, %v2793_v48 }
 0x2d7   : > { %v1140_v51 = vmul.f32 %v1077_v50, %v1077_v50 }
 0x2d9   : > { %v2796_v54 = vpop.f32.mrb[42].mxu0  ;;  %2871 = vmatprep.mubr.f32.mxu1 %v1140_v51 }
 0x2da   : > { %v1087_v55 = vpop.f32.mrb[43].mxu0  ;;  %2872 = vmatmul.mubr.f32.gmra.mrb[72].mxu1 %v1141_v52  ;;  %v1143_v57 = vmul.f32 %v2796_v54, %v2796_v54 }
 0x2db   : > { %v1142_v56 = vmul.f32 %v1087_v55, %v1087_v55 }
 0x2dd   : > { %v2799_v58 = vpop.f32.mrb[44].mxu0  ;;  %2874 = vmatprep.mubr.f32.mxu1 %v1142_v56 }
 0x2de   : > { %v1097_v59 = vpop.f32.mrb[45].mxu0  ;;  %2875 = vmatmul.mubr.f32.gmra.mrb[74].mxu1 %v1143_v57  ;;  %v1145_v62 = vmul.f32 %v2799_v58, %v2799_v58 }
 0x2df   : > { %v1144_v60 = vmul.f32 %v1097_v59, %v1097_v59 }
 0x2e1   : > { %v2802_v63 = vpop.f32.mrb[46].mxu0  ;;  %2877 = vmatprep.mubr.f32.mxu1 %v1144_v60 }
 0x2e2   : > { %v1107_v1 = vpop.f32.mrb[47].mxu0  ;;  %2878 = vmatmul.mubr.f32.gmra.mrb[76].mxu1 %v1145_v62  ;;  %v1147_v3 = vmul.f32 %v2802_v63, %v2802_v63 }
 0x2e3   : > { %v1146_v2 = vmul.f32 %v1107_v1, %v1107_v1 }
 0x2e5   : > { %2880 = vmatprep.mubr.f32.mxu1 %v1146_v2  ;;  %v2917_v8 = vpop.f32.mrb[48].mxu0 }
 0x2e6   : > { %2881 = vmatmul.mubr.f32.gmra.mrb[78].mxu1 %v1147_v3  ;;  %v1471_v13 = vpop.f32.mrb[49].mxu0  ;;  %v1635_v30 = vadd.f32 %v2917_v8, %v3891_v24 }
 0x2e7   : > { %v1634_v34 = vadd.f32 %v3891_v24, %v1471_v13 }
 0x2e9   : > { %v2920_v22 = vpop.f32.mrb[50].mxu0 }
 0x2ea   : > { %v1481_v27 = vpop.f32.mrb[51].mxu0  ;;  %v1637_v40 = vadd.f32 %v2920_v22, %v3891_v24 }
 0x2eb   : > { %v1636_v45 = vadd.f32 %v3891_v24, %v1481_v27 }
 0x2ed   : > { %v2923_v31 = vpop.f32.mrb[52].mxu0 }
 0x2ee   : > { %v1491_v39 = vpop.f32.mrb[53].mxu0  ;;  %v1639_v52 = vadd.f32 %v2923_v31, %v3891_v24 }
 0x2ef   : > { %v1638_v56 = vadd.f32 %v3891_v24, %v1491_v39 }
 0x2f1   : > { %v2926_v42 = vpop.f32.mrb[54].mxu0 }
 0x2f2   : > { %v1501_v49 = vpop.f32.mrb[55].mxu0  ;;  %v1641_v62 = vadd.f32 %v2926_v42, %v3891_v24 }
 0x2f3   : > { %v1640_v2 = vadd.f32 %v3891_v24, %v1501_v49 }
 0x2f5   : > { %v3844_v53 = vpop.f32.mrb[56].mxu0 }
 0x2f6   : > { %v3846_v61 = vpop.f32.mrb[57].mxu0  ;;  %v1643_v27 = vadd.f32 %v3844_v53, %v3891_v24 }
 0x2f7   : > { %v1642_v42 = vadd.f32 %v3891_v24, %v3846_v61 }
 0x2f9   : > { %v3848_v0 = vpop.f32.mrb[58].mxu0 }
 0x2fa   : > { %v3850_v4 = vpop.f32.mrb[59].mxu0 }
 0x2fd   : > { %v3852_v17 = vpop.f32.mrb[60].mxu0 }
 0x2fe   : > { %v3854_v5 = vpop.f32.mrb[61].mxu0 }
 0x301   : > { %v3856_v6 = vpop.f32.mrb[62].mxu0 }
 0x302   : > { %v3858_v43 = vpop.f32.mrb[63].mxu0 }
 0x305   : > { %v3860_v46 = vpop.f32.mrb[64].mxu0 }
 0x306   : > { %v3862_v7 = vpop.f32.mrb[65].mxu0 }
 0x309   : > { %v3864_v9 = vpop.f32.mrb[66].mxu0 }
 0x30a   : > { %v3866_v10 = vpop.f32.mrb[67].mxu0 }
 0x30d   : > { %v3868_v11 = vpop.f32.mrb[68].mxu0 }
 0x30e   : > { %v3870_v12 = vpop.f32.mrb[69].mxu0 }
 0x311   : > { %v3872_v14 = vpop.f32.mrb[70].mxu0 }
 0x312   : > { %v3874_v15 = vpop.f32.mrb[71].mxu0 }
 0x315   : > { %v3876_v16 = vpop.f32.mrb[72].mxu0 }
 0x316   : > { %v3878_v18 = vpop.f32.mrb[73].mxu0 }
 0x319   : > { %v3880_v19 = vpop.f32.mrb[74].mxu0 }
 0x31a   : > { %v3882_v20 = vpop.f32.mrb[75].mxu0 }
 0x31d   : > { %v3884_v21 = vpop.f32.mrb[76].mxu0 }
 0x31e   : > { %v3886_v23 = vpop.f32.mrb[77].mxu0 }
 0x321   : > { %v2962_v25 = vpop.f32.mrb[78].mxu0 }
 0x322   : > { %v3894_v26 = vadd.f32 %v2962_v25, %v3891_v24  ;;  %v3896_v28 = vpop.f32.mrb[79].mxu0 }
 0x37d   : > { %v2837_v29 = vpop.f32.mrb[48].mxu1 }
 0x37e   : > { %v1667_v32 = vmul.f32 0.5, %v2837_v29  ;;  %v1230_v33 = vpop.f32.mrb[49].mxu1 }
 0x37f   : > { %v1666_v35 = vmul.f32 0.5, %v1230_v33 }
 0x380   : > { %v3900_v36 = vsub.f32 %v1635_v30, %v1667_v32  ;;  %v1645_v32 = vadd.f32 %v3848_v0, %v3891_v24 }
 0x381   : > { %v2840_v37 = vpop.f32.mrb[50].mxu1  ;;  %v3902_v38 = vsub.f32 %v1634_v34, %v1666_v35  ;;  %v1644_v34 = vadd.f32 %v3891_v24, %v3850_v4 }
 0x382   : > { %v1669_v41 = vmul.f32 0.5, %v2840_v37  ;;  %v1240_v44 = vpop.f32.mrb[51].mxu1  ;;  %1732 = vmax.xlane.f32.xlu0 %v3900_v36 }
 0x383   : > { %v1668_v47 = vmul.f32 0.5, %v1240_v44 }
 0x384   : > { %v3907_v48 = vsub.f32 %v1637_v40, %v1669_v41  ;;  %v1647_v41 = vadd.f32 %v3852_v17, %v3891_v24 }
 0x385   : > { %v2843_v50 = vpop.f32.mrb[52].mxu1  ;;  %v3909_v51 = vsub.f32 %v1636_v45, %v1668_v47  ;;  %v1646_v45 = vadd.f32 %v3891_v24, %v3854_v5 }
 0x386   : > { %v1671_v54 = vmul.f32 0.5, %v2843_v50  ;;  %v1250_v55 = vpop.f32.mrb[53].mxu1  ;;  %1730 = vmax.xlane.f32.xlu0 %v3902_v38  ;;  %1736 = vmax.xlane.f32.xlu1 %v3907_v48 }
 0x387   : > { %v1670_v57 = vmul.f32 0.5, %v1250_v55 }
 0x388   : > { %v3915_v58 = vsub.f32 %v1639_v52, %v1671_v54  ;;  %v1649_v54 = vadd.f32 %v3856_v6, %v3891_v24 }
 0x389   : > { %v2846_v59 = vpop.f32.mrb[54].mxu1  ;;  %v3917_v60 = vsub.f32 %v1638_v56, %v1670_v57  ;;  %v1648_v56 = vadd.f32 %v3891_v24, %v3858_v43 }
 0x38a   : > { %v1673_v63 = vmul.f32 0.5, %v2846_v59  ;;  %v1260_v1 = vpop.f32.mrb[55].mxu1  ;;  %1734 = vmax.xlane.f32.xlu1 %v3909_v51 }
 0x38b   : > { %v1672_v3 = vmul.f32 0.5, %v1260_v1  ;;  %1738 = vmax.xlane.f32.xlu0 %v3917_v60 }
 0x38c   : > { %v3923_v8 = vsub.f32 %v1641_v62, %v1673_v63  ;;  %v1651_v63 = vadd.f32 %v3860_v46, %v3891_v24 }
 0x38d   : > { %v2849_v13 = vpop.f32.mrb[56].mxu1  ;;  %v3925_v22 = vsub.f32 %v1640_v2, %v1672_v3  ;;  %v1650_v2 = vadd.f32 %v3891_v24, %v3862_v7 }
 0x38e   : > { %v1675_v31 = vmul.f32 0.5, %v2849_v13  ;;  %v1270_v39 = vpop.f32.mrb[57].mxu1  ;;  %1740 = vmax.xlane.f32.xlu1 %v3915_v58 }
 0x38f   : > { %v1674_v25 = vmul.f32 0.5, %v1270_v39  ;;  %1742 = vmax.xlane.f32.xlu0 %v3925_v22 }
 0x390   : > { %v3933_v49 = vsub.f32 %v1643_v27, %v1675_v31  ;;  %v1653_v31 = vadd.f32 %v3864_v9, %v3891_v24 }
 0x391   : > { %v2852_v29 = vpop.f32.mrb[58].mxu1  ;;  %v3935_v30 = vsub.f32 %v1642_v42, %v1674_v25  ;;  %v1652_v42 = vadd.f32 %v3891_v24, %v3866_v10 }
 0x392   : > { %v1677_v33 = vmul.f32 0.5, %v2852_v29  ;;  %v1280_v53 = vpop.f32.mrb[59].mxu1  ;;  %1744 = vmax.xlane.f32.xlu1 %v3923_v8 }
 0x393   : > { %v1676_v35 = vmul.f32 0.5, %v1280_v53  ;;  %1746 = vmax.xlane.f32.xlu0 %v3935_v30 }
 0x394   : > { %v3943_v61 = vsub.f32 %v1645_v32, %v1677_v33  ;;  %v1655_v33 = vadd.f32 %v3868_v11, %v3891_v24 }
 0x395   : > { %v2855_v37 = vpop.f32.mrb[60].mxu1  ;;  %v3945_v40 = vsub.f32 %v1644_v34, %v1676_v35  ;;  %v1654_v34 = vadd.f32 %v3891_v24, %v3870_v12 }
 0x396   : > { %v1679_v44 = vmul.f32 0.5, %v2855_v37  ;;  %v1290_v0 = vpop.f32.mrb[61].mxu1  ;;  %1748 = vmax.xlane.f32.xlu1 %v3933_v49 }
 0x397   : > { %v1678_v47 = vmul.f32 0.5, %v1290_v0  ;;  %1750 = vmax.xlane.f32.xlu0 %v3945_v40 }
 0x398   : > { %v3953_v4 = vsub.f32 %v1647_v41, %v1679_v44  ;;  %v1657_v44 = vadd.f32 %v3872_v14, %v3891_v24 }
 0x399   : > { %v2858_v50 = vpop.f32.mrb[62].mxu1  ;;  %v3955_v52 = vsub.f32 %v1646_v45, %v1678_v47  ;;  %v1656_v45 = vadd.f32 %v3891_v24, %v3874_v15 }
 0x39a   : > { %v1681_v55 = vmul.f32 0.5, %v2858_v50  ;;  %v1300_v17 = vpop.f32.mrb[63].mxu1  ;;  %1752 = vmax.xlane.f32.xlu1 %v3943_v61 }
 0x39b   : > { %v1680_v57 = vmul.f32 0.5, %v1300_v17  ;;  %1754 = vmax.xlane.f32.xlu0 %v3955_v52 }
 0x39c   : > { %v3963_v5 = vsub.f32 %v1649_v54, %v1681_v55  ;;  %v1659_v55 = vadd.f32 %v3876_v16, %v3891_v24 }
 0x39d   : > { %v2861_v59 = vpop.f32.mrb[64].mxu1  ;;  %v3965_v62 = vsub.f32 %v1648_v56, %v1680_v57  ;;  %v1658_v56 = vadd.f32 %v3891_v24, %v3878_v18 }
 0x39e   : > { %v1683_v1 = vmul.f32 0.5, %v2861_v59  ;;  %v1310_v6 = vpop.f32.mrb[65].mxu1  ;;  %1756 = vmax.xlane.f32.xlu1 %v3953_v4 }
 0x39f   : > { %v1682_v3 = vmul.f32 0.5, %v1310_v6  ;;  %1758 = vmax.xlane.f32.xlu0 %v3965_v62 }
 0x3a0   : > { %v3973_v43 = vsub.f32 %v1651_v63, %v1683_v1  ;;  %v1661_v1 = vadd.f32 %v3880_v19, %v3891_v24 }
 0x3a1   : > { %v2864_v13 = vpop.f32.mrb[66].mxu1  ;;  %v3975_v27 = vsub.f32 %v1650_v2, %v1682_v3  ;;  %v1660_v2 = vadd.f32 %v3891_v24, %v3882_v20 }
 0x3a2   : > { %v1685_v39 = vmul.f32 0.5, %v2864_v13  ;;  %v1320_v46 = vpop.f32.mrb[67].mxu1  ;;  %1760 = vmax.xlane.f32.xlu1 %v3963_v5 }
 0x3a3   : > { %v1684_v25 = vmul.f32 0.5, %v1320_v46  ;;  %1762 = vmax.xlane.f32.xlu0 %v3975_v27 }
 0x3a4   : > { %v3983_v7 = vsub.f32 %v1653_v31, %v1685_v39  ;;  %v1663_v39 = vadd.f32 %v3884_v21, %v3891_v24  ;;  %v1664_v21 = vadd.f32 %v3891_v24, %v3896_v28 }
 0x3a5   : > { %v2867_v29 = vpop.f32.mrb[68].mxu1  ;;  %v3985_v32 = vsub.f32 %v1652_v42, %v1684_v25  ;;  %v1662_v42 = vadd.f32 %v3891_v24, %v3886_v23 }
 0x3a6   : > { %v1687_v53 = vmul.f32 0.5, %v2867_v29  ;;  %v1330_v9 = vpop.f32.mrb[69].mxu1  ;;  %1764 = vmax.xlane.f32.xlu1 %v3973_v43 }
 0x3a7   : > { %v1686_v35 = vmul.f32 0.5, %v1330_v9  ;;  %1766 = vmax.xlane.f32.xlu0 %v3985_v32 }
 0x3a8   : > { %v3993_v10 = vsub.f32 %v1655_v33, %v1687_v53 }
 0x3a9   : > { %v2870_v37 = vpop.f32.mrb[70].mxu1  ;;  %v3995_v41 = vsub.f32 %v1654_v34, %v1686_v35 }
 0x3aa   : > { %v1689_v0 = vmul.f32 0.5, %v2870_v37  ;;  %v1340_v11 = vpop.f32.mrb[71].mxu1  ;;  %1768 = vmax.xlane.f32.xlu1 %v3983_v7 }
 0x3ab   : > { %v1688_v47 = vmul.f32 0.5, %v1340_v11  ;;  %1770 = vmax.xlane.f32.xlu0 %v3995_v41 }
 0x3ac   : > { %v4003_v12 = vsub.f32 %v1657_v44, %v1689_v0 }
 0x3ad   : > { %v2873_v50 = vpop.f32.mrb[72].mxu1  ;;  %v4005_v54 = vsub.f32 %v1656_v45, %v1688_v47 }
 0x3ae   : > { %v1691_v17 = vmul.f32 0.5, %v2873_v50  ;;  %v1350_v14 = vpop.f32.mrb[73].mxu1  ;;  %1772 = vmax.xlane.f32.xlu1 %v3993_v10 }
 0x3af   : > { %v1690_v57 = vmul.f32 0.5, %v1350_v14  ;;  %1774 = vmax.xlane.f32.xlu0 %v4005_v54 }
 0x3b0   : > { %v4013_v15 = vsub.f32 %v1659_v55, %v1691_v17 }
 0x3b1   : > { %v2876_v59 = vpop.f32.mrb[74].mxu1  ;;  %v4015_v63 = vsub.f32 %v1658_v56, %v1690_v57 }
 0x3b2   : > { %v1693_v6 = vmul.f32 0.5, %v2876_v59  ;;  %v1360_v16 = vpop.f32.mrb[75].mxu1  ;;  %1776 = vmax.xlane.f32.xlu1 %v4003_v12 }
 0x3b3   : > { %v1692_v3 = vmul.f32 0.5, %v1360_v16  ;;  %1778 = vmax.xlane.f32.xlu0 %v4015_v63 }
 0x3b4   : > { %v4023_v18 = vsub.f32 %v1661_v1, %v1693_v6 }
 0x3b5   : > { %v2879_v13 = vpop.f32.mrb[76].mxu1  ;;  %v4025_v31 = vsub.f32 %v1660_v2, %v1692_v3 }
 0x3b6   : > { %v1695_v46 = vmul.f32 0.5, %v2879_v13  ;;  %v1370_v19 = vpop.f32.mrb[77].mxu1  ;;  %1780 = vmax.xlane.f32.xlu1 %v4013_v15 }
 0x3b7   : > { %v1694_v25 = vmul.f32 0.5, %v1370_v19  ;;  %1782 = vmax.xlane.f32.xlu0 %v4025_v31 }
 0x3b8   : > { %v4033_v20 = vsub.f32 %v1663_v39, %v1695_v46 }
 0x3b9   : > { %v2882_v29 = vpop.f32.mrb[78].mxu1  ;;  %v4035_v33 = vsub.f32 %v1662_v42, %v1694_v25 }
 0x3ba   : > { %v1697_v53 = vmul.f32 0.5, %v2882_v29  ;;  %1784 = vmax.xlane.f32.xlu1 %v4023_v18  ;;  %v1380_v9 = vpop.f32.mrb[79].mxu1 }
 0x3bb   : > { %v1696_v34 = vmul.f32 0.5, %v1380_v9  ;;  %1786 = vmax.xlane.f32.xlu0 %v4035_v33 }
 0x3bc   : > { %v4042_v23 = vsub.f32 %v3894_v26, %v1697_v53 }
 0x3bd   : > { %v4044_v35 = vsub.f32 %v1664_v21, %v1696_v34 }
 0x3be   : > { %1788 = vmax.xlane.f32.xlu1 %v4033_v20 }
 0x3bf   : > { %1790 = vmax.xlane.f32.xlu0 %v4044_v35 }
 0x3c2   : > { %1792 = vmax.xlane.f32.xlu1 %v4042_v23 }
 0x40f   : > { %v1733_v37 = vpop.xlane.xlu0 %1732 }
 0x410   : > { %v1795_v44 = vsub.f32 %v3900_v36, %v1733_v37 }
 0x412   : > { %v1828_v0 = vmul.f32 1.442695, %v1795_v44 }
 0x413   : > { %v1731_v11 = vpop.xlane.xlu0 %1730  ;;  %v1737_v24 = vpop.xlane.xlu1 %1736 }
 0x414   : > { %3167 = vpow2.f32 %v1828_v0  ;;  %v1794_v28 = vsub.f32 %v3902_v38, %v1731_v11  ;;  %v1797_v26 = vsub.f32 %v3907_v48, %v1737_v24 }
 0x416   : > { %v1826_v45 = vmul.f32 1.442695, %v1794_v28  ;;  %v1832_v47 = vmul.f32 1.442695, %v1797_v26 }
 0x417   : > { %v1735_v50 = vpop.xlane.xlu1 %1734 }
 0x418   : > { %3169 = vpow2.f32 %v1826_v45  ;;  %v1796_v55 = vsub.f32 %v3909_v51, %v1735_v50  ;;  %v1739_v17 = vpop.xlane.xlu0 %1738 }
 0x419   : > { %3171 = vpow2.f32 %v1832_v47  ;;  %v1798_v14 = vsub.f32 %v3917_v60, %v1739_v17 }
 0x41a   : > { %v1830_v56 = vmul.f32 1.442695, %v1796_v55 }
 0x41b   : > { %v1834_v36 = vmul.f32 1.442695, %v1798_v14  ;;  %v1741_v57 = vpop.xlane.xlu1 %1740 }
 0x41c   : > { %3173 = vpow2.f32 %v1830_v56  ;;  %v1799_v59 = vsub.f32 %v3915_v58, %v1741_v57  ;;  %v1743_v1 = vpop.xlane.xlu0 %1742 }
 0x41d   : > { %v1800_v38 = vsub.f32 %v3925_v22, %v1743_v1  ;;  %3175 = vpow2.f32 %v1834_v36 }
 0x41e   : > { %v4056_v48 = vpop.eup %3167  ;;  %v1836_v6 = vmul.f32 1.442695, %v1799_v59 }
 0x41f   : > { %v1838_v16 = vmul.f32 1.442695, %v1800_v38  ;;  %v1745_v2 = vpop.xlane.xlu1 %1744  ;;  %1892 = vadd.xlane.f32.xlu1 %v4056_v48 }
 0x420   : > { %3177 = vpow2.f32 %v1836_v6  ;;  %v1801_v51 = vsub.f32 %v3923_v8, %v1745_v2  ;;  %v1747_v60 = vpop.xlane.xlu0 %1746 }
 0x421   : > { %v1802_v3 = vsub.f32 %v3935_v30, %v1747_v60  ;;  %3179 = vpow2.f32 %v1838_v16 }
 0x422   : > { %v4061_v13 = vpop.eup %3169  ;;  %v1840_v58 = vmul.f32 1.442695, %v1801_v51 }
 0x423   : > { %v4063_v39 = vpop.eup %3171  ;;  %v1842_v22 = vmul.f32 1.442695, %v1802_v3  ;;  %v1749_v46 = vpop.xlane.xlu1 %1748  ;;  %1890 = vadd.xlane.f32.xlu0 %v4061_v13 }
 0x424   : > { %3181 = vpow2.f32 %v1840_v58  ;;  %v1803_v19 = vsub.f32 %v3933_v49, %v1749_v46  ;;  %1896 = vadd.xlane.f32.xlu1 %v4063_v39  ;;  %v1751_v42 = vpop.xlane.xlu0 %1750 }
 0x425   : > { %v1804_v8 = vsub.f32 %v3945_v40, %v1751_v42  ;;  %3183 = vpow2.f32 %v1842_v22 }
 0x426   : > { %v4069_v25 = vpop.eup %3173  ;;  %v1844_v30 = vmul.f32 1.442695, %v1803_v19 }
 0x427   : > { %v1846_v29 = vmul.f32 1.442695, %v1804_v8  ;;  %v1753_v53 = vpop.xlane.xlu1 %1752  ;;  %1894 = vadd.xlane.f32.xlu0 %v4069_v25  ;;  %v4073_v34 = vpop.eup %3175 }
 0x428   : > { %3185 = vpow2.f32 %v1844_v30  ;;  %v1805_v9 = vsub.f32 %v3943_v61, %v1753_v53  ;;  %v1755_v21 = vpop.xlane.xlu0 %1754 }
 0x429   : > { %v1806_v49 = vsub.f32 %v3955_v52, %v1755_v21  ;;  %3187 = vpow2.f32 %v1846_v29 }
 0x42a   : > { %v4076_v37 = vpop.eup %3177  ;;  %v1848_v44 = vmul.f32 1.442695, %v1805_v9 }
 0x42b   : > { %v1850_v40 = vmul.f32 1.442695, %v1806_v49  ;;  %v1757_v0 = vpop.xlane.xlu1 %1756  ;;  %1900 = vadd.xlane.f32.xlu1 %v4076_v37  ;;  %1898 = vadd.xlane.f32.xlu0 %v4073_v34  ;;  %v4081_v61 = vpop.eup %3179 }
 0x42c   : > { %3189 = vpow2.f32 %v1848_v44  ;;  %v1807_v11 = vsub.f32 %v3953_v4, %v1757_v0  ;;  %v1759_v24 = vpop.xlane.xlu0 %1758 }
 0x42d   : > { %v1808_v28 = vsub.f32 %v3965_v62, %v1759_v24  ;;  %3191 = vpow2.f32 %v1850_v40 }
 0x42e   : > { %v4084_v26 = vpop.eup %3181  ;;  %v1852_v52 = vmul.f32 1.442695, %v1807_v11 }
 0x42f   : > { %v1854_v45 = vmul.f32 1.442695, %v1808_v28  ;;  %v1761_v47 = vpop.xlane.xlu1 %1760  ;;  %1904 = vadd.xlane.f32.xlu1 %v4084_v26  ;;  %1902 = vadd.xlane.f32.xlu0 %v4081_v61  ;;  %v4089_v4 = vpop.eup %3183 }
 0x430   : > { %3193 = vpow2.f32 %v1852_v52  ;;  %v1809_v50 = vsub.f32 %v3963_v5, %v1761_v47  ;;  %v1763_v55 = vpop.xlane.xlu0 %1762 }
 0x431   : > { %v1810_v17 = vsub.f32 %v3975_v27, %v1763_v55  ;;  %3195 = vpow2.f32 %v1854_v45 }
 0x432   : > { %v4092_v14 = vpop.eup %3185  ;;  %v1856_v62 = vmul.f32 1.442695, %v1809_v50 }
 0x433   : > { %v1858_v56 = vmul.f32 1.442695, %v1810_v17  ;;  %v1765_v36 = vpop.xlane.xlu1 %1764  ;;  %1908 = vadd.xlane.f32.xlu1 %v4092_v14  ;;  %1906 = vadd.xlane.f32.xlu0 %v4089_v4  ;;  %v4097_v5 = vpop.eup %3187 }
 0x434   : > { %3197 = vpow2.f32 %v1856_v62  ;;  %v1811_v57 = vsub.f32 %v3973_v43, %v1765_v36  ;;  %v1767_v59 = vpop.xlane.xlu0 %1766 }
 0x435   : > { %v1812_v1 = vsub.f32 %v3985_v32, %v1767_v59  ;;  %3199 = vpow2.f32 %v1858_v56 }
 0x436   : > { %v4100_v38 = vpop.eup %3189  ;;  %v1860_v27 = vmul.f32 1.442695, %v1811_v57 }
 0x437   : > { %v1862_v6 = vmul.f32 1.442695, %v1812_v1  ;;  %v1769_v16 = vpop.xlane.xlu1 %1768  ;;  %1912 = vadd.xlane.f32.xlu1 %v4100_v38  ;;  %1910 = vadd.xlane.f32.xlu0 %v4097_v5  ;;  %v4105_v43 = vpop.eup %3191 }
 0x438   : > { %3201 = vpow2.f32 %v1860_v27  ;;  %v1813_v2 = vsub.f32 %v3983_v7, %v1769_v16  ;;  %v1771_v51 = vpop.xlane.xlu0 %1770 }
 0x439   : > { %v1814_v60 = vsub.f32 %v3995_v41, %v1771_v51  ;;  %3203 = vpow2.f32 %v1862_v6 }
 0x43a   : > { %v4108_v3 = vpop.eup %3193  ;;  %v1864_v32 = vmul.f32 1.442695, %v1813_v2 }
 0x43b   : > { %v1866_v58 = vmul.f32 1.442695, %v1814_v60  ;;  %v1773_v22 = vpop.xlane.xlu1 %1772  ;;  %1916 = vadd.xlane.f32.xlu1 %v4108_v3  ;;  %1914 = vadd.xlane.f32.xlu0 %v4105_v43  ;;  %v4113_v7 = vpop.eup %3195 }
 0x43c   : > { %3205 = vpow2.f32 %v1864_v32  ;;  %v1815_v46 = vsub.f32 %v3993_v10, %v1773_v22  ;;  %v1775_v19 = vpop.xlane.xlu0 %1774 }
 0x43d   : > { %v1816_v42 = vsub.f32 %v4005_v54, %v1775_v19  ;;  %3207 = vpow2.f32 %v1866_v58 }
 0x43e   : > { %v4116_v8 = vpop.eup %3197  ;;  %v1868_v41 = vmul.f32 1.442695, %v1815_v46 }
 0x43f   : > { %v1870_v30 = vmul.f32 1.442695, %v1816_v42  ;;  %v1777_v29 = vpop.xlane.xlu1 %1776  ;;  %1920 = vadd.xlane.f32.xlu1 %v4116_v8  ;;  %1918 = vadd.xlane.f32.xlu0 %v4113_v7  ;;  %v4121_v10 = vpop.eup %3199 }
 0x440   : > { %3209 = vpow2.f32 %v1868_v41  ;;  %v1817_v53 = vsub.f32 %v4003_v12, %v1777_v29  ;;  %v1779_v9 = vpop.xlane.xlu0 %1778 }
 0x441   : > { %v1818_v21 = vsub.f32 %v4015_v63, %v1779_v9  ;;  %3211 = vpow2.f32 %v1870_v30 }
 0x442   : > { %v4124_v49 = vpop.eup %3201  ;;  %v1872_v54 = vmul.f32 1.442695, %v1817_v53 }
 0x443   : > { %v1874_v44 = vmul.f32 1.442695, %v1818_v21  ;;  %v1781_v40 = vpop.xlane.xlu1 %1780  ;;  %1924 = vadd.xlane.f32.xlu1 %v4124_v49  ;;  %1922 = vadd.xlane.f32.xlu0 %v4121_v10  ;;  %v4129_v12 = vpop.eup %3203 }
 0x444   : > { %3213 = vpow2.f32 %v1872_v54  ;;  %v1819_v0 = vsub.f32 %v4013_v15, %v1781_v40  ;;  %v1783_v11 = vpop.xlane.xlu0 %1782 }
 0x445   : > { %v1820_v24 = vsub.f32 %v4025_v31, %v1783_v11  ;;  %3215 = vpow2.f32 %v1874_v44 }
 0x446   : > { %v4132_v28 = vpop.eup %3205  ;;  %v1876_v63 = vmul.f32 1.442695, %v1819_v0 }
 0x447   : > { %v1878_v52 = vmul.f32 1.442695, %v1820_v24  ;;  %v1785_v45 = vpop.xlane.xlu1 %1784  ;;  %1928 = vadd.xlane.f32.xlu1 %v4132_v28  ;;  %1926 = vadd.xlane.f32.xlu0 %v4129_v12  ;;  %v4137_v15 = vpop.eup %3207 }
 0x448   : > { %3217 = vpow2.f32 %v1876_v63  ;;  %v1821_v47 = vsub.f32 %v4023_v18, %v1785_v45  ;;  %v1787_v50 = vpop.xlane.xlu0 %1786 }
 0x449   : > { %v1822_v55 = vsub.f32 %v4035_v33, %v1787_v50  ;;  %3219 = vpow2.f32 %v1878_v52 }
 0x44a   : > { %v4140_v17 = vpop.eup %3209  ;;  %v1880_v31 = vmul.f32 1.442695, %v1821_v47 }
 0x44b   : > { %v1882_v62 = vmul.f32 1.442695, %v1822_v55  ;;  %v1789_v56 = vpop.xlane.xlu1 %1788  ;;  %1932 = vadd.xlane.f32.xlu1 %v4140_v17  ;;  %1930 = vadd.xlane.f32.xlu0 %v4137_v15  ;;  %v4145_v18 = vpop.eup %3211 }
 0x44c   : > { %3221 = vpow2.f32 %v1880_v31  ;;  %v1823_v36 = vsub.f32 %v4033_v20, %v1789_v56  ;;  %v1791_v57 = vpop.xlane.xlu0 %1790 }
 0x44d   : > { %v1824_v59 = vsub.f32 %v4044_v35, %v1791_v57  ;;  %3223 = vpow2.f32 %v1882_v62 }
 0x44e   : > { %v4148_v1 = vpop.eup %3213  ;;  %v1884_v33 = vmul.f32 1.442695, %v1823_v36 }
 0x44f   : > { %v1886_v27 = vmul.f32 1.442695, %v1824_v59  ;;  %1936 = vadd.xlane.f32.xlu1 %v4148_v1  ;;  %v1793_v6 = vpop.xlane.xlu1 %1792  ;;  %1934 = vadd.xlane.f32.xlu0 %v4145_v18  ;;  %v4153_v2 = vpop.eup %3215 }
 0x450   : > { %3225 = vpow2.f32 %v1884_v33  ;;  %v1825_v16 = vsub.f32 %v4042_v23, %v1793_v6 }
 0x451   : > { %3227 = vpow2.f32 %v1886_v27 }
 0x452   : > { %v4155_v20 = vpop.eup %3217  ;;  %v1888_v51 = vmul.f32 1.442695, %v1825_v16 }
 0x453   : > { %1940 = vadd.xlane.f32.xlu1 %v4155_v20  ;;  %1938 = vadd.xlane.f32.xlu0 %v4153_v2  ;;  %v4159_v35 = vpop.eup %3219 }
 0x454   : > { %3229 = vpow2.f32 %v1888_v51 }
 0x456   : > { %v4161_v60 = vpop.eup %3221 }
 0x457   : > { %1944 = vadd.xlane.f32.xlu1 %v4161_v60  ;;  %1942 = vadd.xlane.f32.xlu0 %v4159_v35  ;;  %v4165_v23 = vpop.eup %3223 }
 0x45a   : > { %v4167_v32 = vpop.eup %3225 }
 0x45b   : > { %1948 = vadd.xlane.f32.xlu1 %v4167_v32  ;;  %1946 = vadd.xlane.f32.xlu0 %v4165_v23  ;;  %v4171_v58 = vpop.eup %3227 }
 0x45e   : > { %v4173_v22 = vpop.eup %3229 }
 0x45f   : > { %1952 = vadd.xlane.f32.xlu1 %v4173_v22  ;;  %1950 = vadd.xlane.f32.xlu0 %v4171_v58 }
 0x4ac   : > { %v1893_v46 = vpop.xlane.xlu1 %1892 }
 0x4ad   : > { %3231 = vrcp.f32 %v1893_v46 }
 0x4b0   : > { %v1891_v19 = vpop.xlane.xlu0 %1890 }
 0x4b1   : > { %v1897_v42 = vpop.xlane.xlu1 %1896  ;;  %3233 = vrcp.f32 %v1891_v19 }
 0x4b2   : > { %3235 = vrcp.f32 %v1897_v42 }
 0x4b4   : > { %v1895_v41 = vpop.xlane.xlu0 %1894 }
 0x4b5   : > { %3237 = vrcp.f32 %v1895_v41 }
 0x4b7   : > { %v3232_v30 = vpop.eup %3231 }
 0x4b8   : > { %v1957_v29 = vmul.f32 %v3232_v30, %v4056_v48  ;;  %v1901_v53 = vpop.xlane.xlu1 %1900  ;;  %v1899_v9 = vpop.xlane.xlu0 %1898 }
 0x4b9   : > { %3239 = vrcp.f32 %v1901_v53 }
 0x4ba   : > { %2019 = vst [vmem:[%s4179_s16 + $0x8] sm:$0xff] %v1957_v29  ;;  %3241 = vrcp.f32 %v1899_v9 }
 0x4bb   : > { %v3234_v21 = vpop.eup %3233 }
 0x4bc   : > { %v3236_v54 = vpop.eup %3235  ;;  %v1955_v44 = vmul.f32 %v3234_v21, %v4061_v13  ;;  %v1905_v40 = vpop.xlane.xlu1 %1904 }
 0x4bd   : > { %v1903_v0 = vpop.xlane.xlu0 %1902  ;;  %v1961_v11 = vmul.f32 %v3236_v54, %v4063_v39  ;;  %3243 = vrcp.f32 %v1905_v40 }
 0x4be   : > { %2018 = vst [vmem:[%s4179_s16] sm:$0xff] %v1955_v44  ;;  %3245 = vrcp.f32 %v1903_v0 }
 0x4bf   : > { %v3238_v48 = vpop.eup %3237  ;;  %2021 = vst [vmem:[%s4179_s16 + $0x18] sm:$0xff] %v1961_v11 }
 0x4c0   : > { %v1959_v24 = vmul.f32 %v3238_v48, %v4069_v25  ;;  %v1909_v63 = vpop.xlane.xlu1 %1908 }
 0x4c1   : > { %v1907_v52 = vpop.xlane.xlu0 %1906  ;;  %3247 = vrcp.f32 %v1909_v63 }
 0x4c2   : > { %2020 = vst [vmem:[%s4179_s16 + $0x10] sm:$0xff] %v1959_v24  ;;  %3249 = vrcp.f32 %v1907_v52 }
 0x4c3   : > { %v3240_v45 = vpop.eup %3239 }
 0x4c4   : > { %v3242_v13 = vpop.eup %3241  ;;  %v1965_v47 = vmul.f32 %v3240_v45, %v4076_v37  ;;  %v1913_v39 = vpop.xlane.xlu1 %1912 }
 0x4c5   : > { %v1911_v50 = vpop.xlane.xlu0 %1910  ;;  %v1963_v55 = vmul.f32 %v3242_v13, %v4073_v34  ;;  %3251 = vrcp.f32 %v1913_v39 }
 0x4c6   : > { %2023 = vst [vmem:[%s4179_s16 + $0x28] sm:$0xff] %v1965_v47  ;;  %3253 = vrcp.f32 %v1911_v50 }
 0x4c7   : > { %v3244_v25 = vpop.eup %3243  ;;  %2022 = vst [vmem:[%s4179_s16 + $0x20] sm:$0xff] %v1963_v55 }
 0x4c8   : > { %v3246_v31 = vpop.eup %3245  ;;  %v1969_v62 = vmul.f32 %v3244_v25, %v4084_v26  ;;  %v1917_v56 = vpop.xlane.xlu1 %1916 }
 0x4c9   : > { %v1915_v36 = vpop.xlane.xlu0 %1914  ;;  %v1967_v57 = vmul.f32 %v3246_v31, %v4081_v61  ;;  %3255 = vrcp.f32 %v1917_v56 }
 0x4ca   : > { %2025 = vst [vmem:[%s4179_s16 + $0x38] sm:$0xff] %v1969_v62  ;;  %3257 = vrcp.f32 %v1915_v36 }
 0x4cb   : > { %v3248_v37 = vpop.eup %3247  ;;  %2024 = vst [vmem:[%s4179_s16 + $0x30] sm:$0xff] %v1967_v57 }
 0x4cc   : > { %v3250_v34 = vpop.eup %3249  ;;  %v1973_v59 = vmul.f32 %v3248_v37, %v4092_v14  ;;  %v1921_v33 = vpop.xlane.xlu1 %1920 }
 0x4cd   : > { %v1919_v27 = vpop.xlane.xlu0 %1918  ;;  %v1971_v6 = vmul.f32 %v3250_v34, %v4089_v4  ;;  %3259 = vrcp.f32 %v1921_v33 }
 0x4ce   : > { %2027 = vst [vmem:[%s4179_s16 + $0x48] sm:$0xff] %v1973_v59  ;;  %3261 = vrcp.f32 %v1919_v27 }
 0x4cf   : > { %v3252_v26 = vpop.eup %3251  ;;  %2026 = vst [vmem:[%s4179_s16 + $0x40] sm:$0xff] %v1971_v6 }
 0x4d0   : > { %v3254_v61 = vpop.eup %3253  ;;  %v1977_v16 = vmul.f32 %v3252_v26, %v4100_v38  ;;  %v1925_v51 = vpop.xlane.xlu1 %1924 }
 0x4d1   : > { %v1923_v46 = vpop.xlane.xlu0 %1922  ;;  %v1975_v19 = vmul.f32 %v3254_v61, %v4097_v5  ;;  %3263 = vrcp.f32 %v1925_v51 }
 0x4d2   : > { %2029 = vst [vmem:[%s4179_s16 + $0x58] sm:$0xff] %v1977_v16  ;;  %3265 = vrcp.f32 %v1923_v46 }
 0x4d3   : > { %v3256_v14 = vpop.eup %3255  ;;  %2028 = vst [vmem:[%s4179_s16 + $0x50] sm:$0xff] %v1975_v19 }
 0x4d4   : > { %v3258_v4 = vpop.eup %3257  ;;  %v1981_v42 = vmul.f32 %v3256_v14, %v4108_v3  ;;  %v1929_v41 = vpop.xlane.xlu1 %1928 }
 0x4d5   : > { %v1927_v30 = vpop.xlane.xlu0 %1926  ;;  %v1979_v29 = vmul.f32 %v3258_v4, %v4105_v43  ;;  %3267 = vrcp.f32 %v1929_v41 }
 0x4d6   : > { %2031 = vst [vmem:[%s4179_s16 + $0x68] sm:$0xff] %v1981_v42  ;;  %3269 = vrcp.f32 %v1927_v30 }
 0x4d7   : > { %v3260_v38 = vpop.eup %3259  ;;  %2030 = vst [vmem:[%s4179_s16 + $0x60] sm:$0xff] %v1979_v29 }
 0x4d8   : > { %v3262_v5 = vpop.eup %3261  ;;  %v1985_v53 = vmul.f32 %v3260_v38, %v4116_v8  ;;  %v1933_v9 = vpop.xlane.xlu1 %1932 }
 0x4d9   : > { %v1931_v21 = vpop.xlane.xlu0 %1930  ;;  %v1983_v54 = vmul.f32 %v3262_v5, %v4113_v7  ;;  %3271 = vrcp.f32 %v1933_v9 }
 0x4da   : > { %2033 = vst [vmem:[%s4179_s16 + $0x78] sm:$0xff] %v1985_v53  ;;  %3273 = vrcp.f32 %v1931_v21 }
 0x4db   : > { %v3264_v3 = vpop.eup %3263  ;;  %2032 = vst [vmem:[%s4179_s16 + $0x70] sm:$0xff] %v1983_v54 }
 0x4dc   : > { %v3266_v43 = vpop.eup %3265  ;;  %v1989_v44 = vmul.f32 %v3264_v3, %v4124_v49  ;;  %v1937_v40 = vpop.xlane.xlu1 %1936 }
 0x4dd   : > { %v1935_v0 = vpop.xlane.xlu0 %1934  ;;  %v1987_v11 = vmul.f32 %v3266_v43, %v4121_v10  ;;  %3275 = vrcp.f32 %v1937_v40 }
 0x4de   : > { %2035 = vst [vmem:[%s4179_s16 + $0x88] sm:$0xff] %v1989_v44  ;;  %3277 = vrcp.f32 %v1935_v0 }
 0x4df   : > { %v3268_v8 = vpop.eup %3267  ;;  %2034 = vst [vmem:[%s4179_s16 + $0x80] sm:$0xff] %v1987_v11 }
 0x4e0   : > { %v3270_v7 = vpop.eup %3269  ;;  %v1993_v48 = vmul.f32 %v3268_v8, %v4132_v28  ;;  %v1941_v24 = vpop.xlane.xlu1 %1940 }
 0x4e1   : > { %v1939_v63 = vpop.xlane.xlu0 %1938  ;;  %v1991_v52 = vmul.f32 %v3270_v7, %v4129_v12  ;;  %3279 = vrcp.f32 %v1941_v24 }
 0x4e2   : > { %2037 = vst [vmem:[%s4179_s16 + $0x98] sm:$0xff] %v1993_v48  ;;  %3281 = vrcp.f32 %v1939_v63 }
 0x4e3   : > { %v3272_v49 = vpop.eup %3271  ;;  %2036 = vst [vmem:[%s4179_s16 + $0x90] sm:$0xff] %v1991_v52 }
 0x4e4   : > { %v3274_v10 = vpop.eup %3273  ;;  %v1997_v45 = vmul.f32 %v3272_v49, %v4140_v17  ;;  %v1945_v13 = vpop.xlane.xlu1 %1944 }
 0x4e5   : > { %v1943_v47 = vpop.xlane.xlu0 %1942  ;;  %v1995_v39 = vmul.f32 %v3274_v10, %v4137_v15  ;;  %3283 = vrcp.f32 %v1945_v13 }
 0x4e6   : > { %2039 = vst [vmem:[%s4179_s16 + $0xa8] sm:$0xff] %v1997_v45  ;;  %3285 = vrcp.f32 %v1943_v47 }
 0x4e7   : > { %v3276_v28 = vpop.eup %3275  ;;  %2038 = vst [vmem:[%s4179_s16 + $0xa0] sm:$0xff] %v1995_v39 }
 0x4e8   : > { %v3278_v12 = vpop.eup %3277  ;;  %v2001_v50 = vmul.f32 %v3276_v28, %v4148_v1  ;;  %v1949_v55 = vpop.xlane.xlu1 %1948 }
 0x4e9   : > { %v1947_v25 = vpop.xlane.xlu0 %1946  ;;  %v1999_v31 = vmul.f32 %v3278_v12, %v4145_v18  ;;  %3287 = vrcp.f32 %v1949_v55 }
 0x4ea   : > { %2041 = vst [vmem:[%s4179_s16 + $0xb8] sm:$0xff] %v2001_v50  ;;  %3289 = vrcp.f32 %v1947_v25 }
 0x4eb   : > { %v3280_v17 = vpop.eup %3279  ;;  %2040 = vst [vmem:[%s4179_s16 + $0xb0] sm:$0xff] %v1999_v31 }
 0x4ec   : > { %v3282_v15 = vpop.eup %3281  ;;  %v2005_v62 = vmul.f32 %v3280_v17, %v4155_v20  ;;  %v1953_v56 = vpop.xlane.xlu1 %1952 }
 0x4ed   : > { %v1951_v36 = vpop.xlane.xlu0 %1950  ;;  %v2003_v1 = vmul.f32 %v3282_v15, %v4153_v2  ;;  %3291 = vrcp.f32 %v1953_v56 }
 0x4ee   : > { %2043 = vst [vmem:[%s4179_s16 + $0xc8] sm:$0xff] %v2005_v62  ;;  %3293 = vrcp.f32 %v1951_v36 }
 0x4ef   : > { %v3284_v18 = vpop.eup %3283  ;;  %2042 = vst [vmem:[%s4179_s16 + $0xc0] sm:$0xff] %v2003_v1 }
 0x4f0   : > { %v3286_v57 = vpop.eup %3285  ;;  %v2009_v37 = vmul.f32 %v3284_v18, %v4161_v60 }
 0x4f1   : > { %v2007_v34 = vmul.f32 %v3286_v57, %v4159_v35 }
 0x4f2   : > { %2045 = vst [vmem:[%s4179_s16 + $0xd8] sm:$0xff] %v2009_v37 }
 0x4f3   : > { %v3288_v20 = vpop.eup %3287  ;;  %2044 = vst [vmem:[%s4179_s16 + $0xd0] sm:$0xff] %v2007_v34 }
 0x4f4   : > { %v3290_v59 = vpop.eup %3289  ;;  %v2013_v33 = vmul.f32 %v3288_v20, %v4167_v32 }
 0x4f5   : > { %v2011_v2 = vmul.f32 %v3290_v59, %v4165_v23  ;;  %2056 = sbr.rel (!%p3448_p4) target bundleno = 1332 (0x534), region = 52 }
 0x4f6   : > { %2047 = vst [vmem:[%s4179_s16 + $0xe8] sm:$0xff] %v2013_v33 }
 0x4f7   : > { %v3292_v27 = vpop.eup %3291  ;;  %2046 = vst [vmem:[%s4179_s16 + $0xe0] sm:$0xff] %v2011_v2 }
 0x4f8   : > { %v3294_v6 = vpop.eup %3293  ;;  %v2017_v26 = vmul.f32 %v3292_v27, %v4173_v22 }
 0x4f9   : > { %v2015_v61 = vmul.f32 %v3294_v6, %v4171_v58 }
 0x4fa   : > { %2049 = vst [vmem:[%s4179_s16 + $0xf8] sm:$0xff] %v2017_v26 }
 0x4fb   : > { %2048 = vst [vmem:[%s4179_s16 + $0xf0] sm:$0xff] %v2015_v61 }
 0x4fc   : > { %s4401_s24 = smov (!%p2059_p8, %s2058_s24), 32 }
 0x4fd   : > { %s2429_s22 = sshll.u32 %s4401_s24, 7 }
 0x4fe   : > { %p2432_p9 = scmp.eq.s32.totalorder %s2429_s22, 0 }
 0x4ff   : > { %s4257_s23 = sshrl.u32 (!%p2432_p9), %s4401_s24, 5 }
 0x500   : > { %2067 = sbr.rel (%p2432_p9) target bundleno = 1332 (0x534), region = 56  ;;  %p2433_p10 = scmp.le.s32.totalorder (!%p2432_p9), %s4257_s23, 0 }
 0x507   : > { %2345 = sbr.rel (%p2433_p10) target bundleno = 1311 (0x51f), region = 132  ;;  %s4392_s27 = smov (!%p2433_p10), %s4251_s20 }
 0x508   : > { %s4393_s9 = smov (!%p2433_p10), %s4179_s16  ;;  %s4266_s12 = smov (!%p2433_p10), 0  }
 0x509   : > { %s4268_s26 = smov (!%p2433_p10), 0  }
 0x50e LB: >> { %v2191_v35 = vld [vmem:[%s3357_s9] sm:$0xff]  ;;  %v2193_v60 = vld [vmem:[%s3357_s9 + $0x8] sm:$0xff]  ;;  %v2195_v23 = vld [vmem:[%s3357_s9 + $0x10] sm:$0xff]  ;;  %s2255_s21 = sadd.s32 1, %s3361_s12  ;;  %s2185_s26 = sadd.s32 1, %s3365_s26   ;;  %s3365_s26 = sphi %s4268_s26, %s2185_s26   ;;  %s3361_s12 = sphi %s4266_s12, %s4396_s12   ;;  %s3357_s9 = sphi %s4393_s9, %s4395_s9   ;;  %s3353_s27 = sphi %s4392_s27, %s4394_s27  }
 0x50f   : >> { %2192 = vst [vmem:[%s3353_s27] sm:$0xff] %v2191_v35  ;;  %2194 = vst [vmem:[%s3353_s27 + $0x8] sm:$0xff] %v2193_v60  ;;  %v2197_v32 = vld [vmem:[%s3357_s9 + $0x18] sm:$0xff]  ;;  %v2199_v58 = vld [vmem:[%s3357_s9 + $0x20] sm:$0xff]  ;;  %p2256_p11 = scmp.ge.s32.totalorder %s2255_s21, %s4257_s23  ;;  %p2184_p12 = scmp.ge.s32.totalorder %s2185_s26, %s4257_s23 }
 0x510   : >> { %2196 = vst [vmem:[%s3353_s27 + $0x10] sm:$0xff] %v2195_v23  ;;  %v2201_v22 = vld [vmem:[%s3357_s9 + $0x28] sm:$0xff]  ;;  %2198 = vst [vmem:[%s3353_s27 + $0x18] sm:$0xff] %v2197_v32  ;;  %v2203_v16 = vld [vmem:[%s3357_s9 + $0x30] sm:$0xff] }
 0x511   : >> { %2200 = vst [vmem:[%s3353_s27 + $0x20] sm:$0xff] %v2199_v58  ;;  %2202 = vst [vmem:[%s3353_s27 + $0x28] sm:$0xff] %v2201_v22  ;;  %v2205_v51 = vld [vmem:[%s3357_s9 + $0x38] sm:$0xff]  ;;  %v2207_v46 = vld [vmem:[%s3357_s9 + $0x40] sm:$0xff]  ;;  %s4403_s21 = smov (%p2256_p11, %s2255_s21), 0 }
 0x512   : >> { %2204 = vst [vmem:[%s3353_s27 + $0x30] sm:$0xff] %v2203_v16  ;;  %2206 = vst [vmem:[%s3353_s27 + $0x38] sm:$0xff] %v2205_v51  ;;  %v2209_v19 = vld [vmem:[%s3357_s9 + $0x48] sm:$0xff]  ;;  %v2211_v14 = vld [vmem:[%s3357_s9 + $0x50] sm:$0xff]  ;;  %s2434_s29 = sshll.u32 %s4403_s21, 8  ;;  %s4396_s12 = smov %s4403_s21 }
 0x513   : >> { %2208 = vst [vmem:[%s3353_s27 + $0x40] sm:$0xff] %v2207_v46  ;;  %v2213_v4 = vld [vmem:[%s3357_s9 + $0x58] sm:$0xff]  ;;  %2210 = vst [vmem:[%s3353_s27 + $0x48] sm:$0xff] %v2209_v19  ;;  %v2215_v42 = vld [vmem:[%s3357_s9 + $0x60] sm:$0xff]  ;;  %s4324_s30 = scalar_lea.vmem %s4179_s16, %s2434_s29 [#allocation2]   ;;  %s2261_s10 = scalar_lea.vmem %s4251_s20, %s2434_s29  }
 0x514   : >> { %2212 = vst [vmem:[%s3353_s27 + $0x50] sm:$0xff] %v2211_v14  ;;  %2214 = vst [vmem:[%s3353_s27 + $0x58] sm:$0xff] %v2213_v4  ;;  %v2217_v41 = vld [vmem:[%s3357_s9 + $0x68] sm:$0xff]  ;;  %v2219_v30 = vld [vmem:[%s3357_s9 + $0x70] sm:$0xff] }
 0x515   : >> { %2216 = vst [vmem:[%s3353_s27 + $0x60] sm:$0xff] %v2215_v42  ;;  %2218 = vst [vmem:[%s3353_s27 + $0x68] sm:$0xff] %v2217_v41  ;;  %v2221_v29 = vld [vmem:[%s3357_s9 + $0x78] sm:$0xff]  ;;  %v2223_v38 = vld [vmem:[%s3357_s9 + $0x80] sm:$0xff] }
 0x516   : >> { %2220 = vst [vmem:[%s3353_s27 + $0x70] sm:$0xff] %v2219_v30  ;;  %v2225_v5 = vld [vmem:[%s3357_s9 + $0x88] sm:$0xff]  ;;  %2222 = vst [vmem:[%s3353_s27 + $0x78] sm:$0xff] %v2221_v29  ;;  %v2227_v53 = vld [vmem:[%s3357_s9 + $0x90] sm:$0xff] }
 0x517   : >> { %2224 = vst [vmem:[%s3353_s27 + $0x80] sm:$0xff] %v2223_v38  ;;  %2226 = vst [vmem:[%s3353_s27 + $0x88] sm:$0xff] %v2225_v5  ;;  %v2229_v9 = vld [vmem:[%s3357_s9 + $0x98] sm:$0xff]  ;;  %v2231_v21 = vld [vmem:[%s3357_s9 + $0xa0] sm:$0xff] }
 0x518   : >> { %2228 = vst [vmem:[%s3353_s27 + $0x90] sm:$0xff] %v2227_v53  ;;  %2230 = vst [vmem:[%s3353_s27 + $0x98] sm:$0xff] %v2229_v9  ;;  %v2233_v54 = vld [vmem:[%s3357_s9 + $0xa8] sm:$0xff]  ;;  %v2235_v3 = vld [vmem:[%s3357_s9 + $0xb0] sm:$0xff]  ;;  %2187 = sbr.rel (!%p2184_p12) target bundleno = 1294 (0x50e), region = 138 }
 0x519   : >> { %2232 = vst [vmem:[%s3353_s27 + $0xa0] sm:$0xff] %v2231_v21  ;;  %v2237_v43 = vld [vmem:[%s3357_s9 + $0xb8] sm:$0xff]  ;;  %2234 = vst [vmem:[%s3353_s27 + $0xa8] sm:$0xff] %v2233_v54  ;;  %v2239_v44 = vld [vmem:[%s3357_s9 + $0xc0] sm:$0xff] }
 0x51a   : >> { %2236 = vst [vmem:[%s3353_s27 + $0xb0] sm:$0xff] %v2235_v3  ;;  %2238 = vst [vmem:[%s3353_s27 + $0xb8] sm:$0xff] %v2237_v43  ;;  %v2241_v40 = vld [vmem:[%s3357_s9 + $0xc8] sm:$0xff]  ;;  %v2243_v0 = vld [vmem:[%s3357_s9 + $0xd0] sm:$0xff] }
 0x51b   : >> { %2240 = vst [vmem:[%s3353_s27 + $0xc0] sm:$0xff] %v2239_v44  ;;  %2242 = vst [vmem:[%s3353_s27 + $0xc8] sm:$0xff] %v2241_v40  ;;  %v2245_v11 = vld [vmem:[%s3357_s9 + $0xd8] sm:$0xff]  ;;  %v2247_v8 = vld [vmem:[%s3357_s9 + $0xe0] sm:$0xff] }
 0x51c   : >> { %2244 = vst [vmem:[%s3353_s27 + $0xd0] sm:$0xff] %v2243_v0  ;;  %v2249_v7 = vld [vmem:[%s3357_s9 + $0xe8] sm:$0xff]  ;;  %2246 = vst [vmem:[%s3353_s27 + $0xd8] sm:$0xff] %v2245_v11  ;;  %v2251_v48 = vld [vmem:[%s3357_s9 + $0xf0] sm:$0xff] }
 0x51d   : >> { %2248 = vst [vmem:[%s3353_s27 + $0xe0] sm:$0xff] %v2247_v8  ;;  %2250 = vst [vmem:[%s3353_s27 + $0xe8] sm:$0xff] %v2249_v7  ;;  %v2253_v24 = vld [vmem:[%s3357_s9 + $0xf8] sm:$0xff]  ;;  %s4395_s9 = smov %s4324_s30 }
 0x51e   : >> { %2252 = vst [vmem:[%s3353_s27 + $0xf0] sm:$0xff] %v2251_v48  ;;  %2254 = vst [vmem:[%s3353_s27 + $0xf8] sm:$0xff] %v2253_v24  ;;  %s4394_s27 = smov %s2261_s10 }
 0x51f PF: > { %s4365_s11 = sand.u32 31, %s4401_s24   ;;  %s2445_s13 = sshll.u32 %s4257_s23, 8 }
 0x520   : > { %s2266_s14 = scalar_lea.vmem %s4179_s16, %s2445_s13 [#allocation2]   ;;  %s2268_s15 = scalar_lea.vmem %s4251_s20, %s2445_s13  }
 0x521   : > { %p2439_p13 = scmp.le.s32.totalorder %s4365_s11, 0 }
 0x522   : > { %s3367_s17 = smov (!%p2439_p13), %s2268_s15   ;;  %s3371_s18 = smov (!%p2439_p13), %s2266_s14  }
 0x523   : > { %2359 = sbr.rel (%p2439_p13) target bundleno = 1332 (0x534), region = 143  ;;  %s3375_s19 = smov (!%p2439_p13), 0  }
 0x524   : > { %s3379_s22 = smov (!%p2439_p13), 0  }
 0x52a LB: >> { %v2278_v63 = vld [vmem:[%s3373_s18] sm:$0xff]  ;;  %s2280_s24 = sadd.s32 1, %s3377_s19  ;;  %s2272_s22 = sadd.s32 1, %s3381_s22   ;;  %s3381_s22 = sphi %s3379_s22, %s2272_s22   ;;  %s3377_s19 = sphi %s3375_s19, %s3376_s19   ;;  %s3373_s18 = sphi %s3371_s18, %s2285_s18   ;;  %s3369_s17 = sphi %s3367_s17, %s2286_s17  }
 0x52b   : >> { %2279 = vst [vmem:[%s3369_s17] sm:$0xff] %v2278_v63  ;;  %p2281_p0 = scmp.ge.s32.totalorder %s2280_s24, %s4365_s11  ;;  %p2271_p1 = scmp.ge.s32.totalorder %s2272_s22, %s4365_s11 }
 0x52d   : >> { %s4405_s24 = smov (%p2281_p0, %s2280_s24), 0  ;;  %2274 = sbr.rel (!%p2271_p1) target bundleno = 1322 (0x52a), region = 149 }
 0x52e   : >> { %s2440_s16 = sshll.u32 %s4405_s24, 3  ;;  %s3376_s19 = smov %s4405_s24  }
 0x52f   : >> { %s2285_s18 = scalar_lea.vmem %s2266_s14, %s2440_s16 [#allocation2]   ;;  %s2286_s17 = scalar_lea.vmem %s2268_s15, %s2440_s16  }
 0x534 PF: > { %p14_p2 = scmp.ge.s32.totalorder %s3438_s28, 4   ;;  %s4397_s24 = smov %s3345_s25 }
 0x535   : > { %s4398_s25 = smov %s3446_s8  ;;  %s4399_s26 = smov %s3438_s28 }
 0x536   :  { %16 = sbr.rel (!%p14_p2) target bundleno = 2 (0x2), region = 160 }

</bundles_post_ra>
